<compile_context>
chip_gen: v6e
topology: v6e:2x2x1
jax: 0.10.0
libtpu: 0.0.40
codegen_flags: <defaults>
</compile_context>

<pallas_src>
import functools

import jax
import jax.numpy as jnp
import numpy as np
from jax import lax
from jax.experimental import pallas as pl
from jax.experimental.pallas import tpu as pltpu

EPS = 1e-5


def _basic_block_kernel(x_ref, w1_ref, w2_ref, b1_ref, b2_ref, o_ref, h_ref,
                        *, seq_len):
    """One (batch, L-tile) grid step.

    x_ref : (TL+4, Cp)  input rows with a 2-row halo on each side (compute dt)
    w*_ref: (3, Cp, Cp) per-tap weights, BN scale folded in (compute dt)
    b*_ref: (1, Cp)     folded BN bias (f32)
    o_ref : (TL, Cp)    output tile (f32)
    h_ref : (TL+2, Cp)  hidden-activation scratch incl. 1-row halo (compute dt)
    """
    tl = o_ref.shape[0]
    tlh = tl + 2
    f32 = jnp.float32

    # ---- conv1 (+ folded bn1 scale): 3 accumulating per-tap MXU matmuls ----
    # LHS per tap is a shifted ref slice; no im2col slab is materialised.
    acc = jnp.dot(x_ref[pl.ds(0, tlh), :], w1_ref[0], preferred_element_type=f32)
    acc = acc + jnp.dot(x_ref[pl.ds(1, tlh), :], w1_ref[1],
                        preferred_element_type=f32)
    acc = acc + jnp.dot(x_ref[pl.ds(2, tlh), :], w1_ref[2],
                        preferred_element_type=f32)
    h = jnp.maximum(acc + b1_ref[...], 0.0)

    # Zero hidden rows that fall outside the true sequence: conv2's padding=1
    # input beyond [0, L) is zero, not relu(bn1(conv1(0))).
    j = pl.program_id(1)
    row = lax.broadcasted_iota(jnp.int32, (tlh, 1), 0)
    pos = j * tl + row - 1
    h = jnp.where(jnp.logical_and(pos >= 0, pos < seq_len), h, 0.0)
    h_ref[...] = h.astype(h_ref.dtype)        # single store; re-read per tap

    # ---- conv2 (+ folded bn2 scale): 3 accumulating per-tap MXU matmuls ----
    acc = jnp.dot(h_ref[pl.ds(0, tl), :], w2_ref[0], preferred_element_type=f32)
    acc = acc + jnp.dot(h_ref[pl.ds(1, tl), :], w2_ref[1],
                        preferred_element_type=f32)
    acc = acc + jnp.dot(h_ref[pl.ds(2, tl), :], w2_ref[2],
                        preferred_element_type=f32)

    identity = x_ref[pl.ds(2, tl), :].astype(f32)     # downsample=None
    o_ref[...] = jnp.maximum(acc + b2_ref[...] + identity, 0.0).astype(o_ref.dtype)


def basic_block_1d(x_ncl, w1, w2, g1, be1, m1, v1, g2, be2, m2, v2,
                   *, compute_dtype=jnp.float32, block_l=None):
    """x_ncl: (N, C, L) float32 (PyTorch NCL layout).  Returns (N, C, L) f32.

    compute_dtype: MXU-operand / input-DMA dtype (bf16 recommended on v6e/v7x);
                   accumulation, bias, residual and the output stay float32.
    block_l:       rows of output per L tile (default: whole L up to 512).
    """
    N, C, L = x_ncl.shape
    Cp = ((C + 127) // 128) * 128              # lane-dense channel count

    # ---- L tiling: whole sequence for short L, else 512-row (8-aligned) tiles
    if block_l is None:
        block_l = L if L <= 512 else 512
    tl = min(block_l, L)
    if tl < L:
        tl = max(8, (tl // 8) * 8)             # multi-tile blocks must be 8-aligned
    nl = -(-L // tl)
    Lt = nl * tl                               # padded sequence length
    tlh_x = tl + 4                             # input rows per tile (2-row halo)

    # ---- fold eval-mode BatchNorm1d into per-channel scale/bias; fold the
    # scale into the conv weights (conv has no bias).
    s1 = g1 / jnp.sqrt(v1 + EPS)
    b1 = be1 - m1 * s1
    s2 = g2 / jnp.sqrt(v2 + EPS)
    b2 = be2 - m2 * s2

    def prep_w(w, s):
        # (Cout, Cin, 3) -> (3, Cin, Cout), scale per Cout, zero-pad to Cp.
        wt = jnp.transpose(w, (2, 1, 0)) * s[None, None, :]
        wt = jnp.pad(wt, ((0, 0), (0, Cp - C), (0, Cp - C)))
        return wt.astype(compute_dtype)

    w1f = prep_w(w1, s1)
    w2f = prep_w(w2, s2)
    b1p = jnp.pad(b1, (0, Cp - C)).reshape(1, Cp).astype(jnp.float32)
    b2p = jnp.pad(b2, (0, Cp - C)).reshape(1, Cp).astype(jnp.float32)

    # ---- NCL -> NLC in compute dtype; one pad materialises the 2-row halo,
    # the L-remainder padding and the lane-dense channel padding.
    x_nlc = jnp.transpose(x_ncl, (0, 2, 1)).astype(compute_dtype)
    x_pad = jnp.pad(x_nlc, ((0, 0), (2, 2 + Lt - L), (0, Cp - C)))
    if nl == 1:
        x_tiles = x_pad[:, None, :, :]                       # (N, 1, TL+4, Cp)
    else:                                                    # overlapping tiles
        x_tiles = jnp.stack(
            [x_pad[:, j * tl: j * tl + tlh_x, :] for j in range(nl)], axis=1)

    kernel = functools.partial(_basic_block_kernel, seq_len=L)

    def run(single_buffer_weights):
        wkw = ({"pipeline_mode": pl.Buffered(1)} if single_buffer_weights else {})
        grid_spec = pltpu.PrefetchScalarGridSpec(
            num_scalar_prefetch=0,
            grid=(N, nl),
            in_specs=[
                # x tiles: one (TL+4, Cp) halo-extended block per grid step.
                pl.BlockSpec((None, None, tlh_x, Cp), lambda b, j: (b, j, 0, 0)),
                # grid-invariant weights / biases stay VMEM-resident.
                pl.BlockSpec((3, Cp, Cp), lambda b, j: (0, 0, 0), **wkw),
                pl.BlockSpec((3, Cp, Cp), lambda b, j: (0, 0, 0), **wkw),
                pl.BlockSpec((1, Cp), lambda b, j: (0, 0), **wkw),
                pl.BlockSpec((1, Cp), lambda b, j: (0, 0), **wkw),
            ],
            out_specs=pl.BlockSpec((None, tl, Cp), lambda b, j: (b, j, 0)),
            scratch_shapes=[pltpu.VMEM((tl + 2, Cp), compute_dtype)],
        )
        return pl.pallas_call(
            kernel,
            out_shape=jax.ShapeDtypeStruct((N, Lt, Cp), jnp.float32),
            grid_spec=grid_spec,
            compiler_params=pltpu.CompilerParams(
                dimension_semantics=("parallel", "parallel"),
                vmem_limit_bytes=32 * 1024 * 1024),
        )(x_tiles, w1f, w2f, b1p, b2p)

    try:
        out = run(True)        # single-buffer the grid-invariant operands
    except Exception:          # pipeline_mode unsupported -> default buffering
        out = run(False)

    return jnp.transpose(out[:, :L, :C], (0, 2, 1))   # back to (N, C, L)


def reference(x, w1, w2, g1, be1, m1, v1, g2, be2, m2, v2):
    """Pure-JAX reference matching PyTorch eval-mode semantics."""
    dn = ('NCH', 'OIH', 'NCH')

    def conv(a, w):
        return lax.conv_general_dilated(a, w, window_strides=(1,),
                                        padding=((1, 1),),
                                        dimension_numbers=dn)

    def bn(a, g, b, m, v):
        return ((a - m[None, :, None]) / jnp.sqrt(v[None, :, None] + EPS)
                * g[None, :, None] + b[None, :, None])

    out = jax.nn.relu(bn(conv(x, w1), g1, be1, m1, v1))
    out = bn(conv(out, w2), g2, be2, m2, v2)
    return jax.nn.relu(out + x)


def make_case(key, N, C, L):
    ks = jax.random.split(key, 11)
    x = jax.random.normal(ks[0], (N, C, L), jnp.float32)
    w1 = 0.1 * jax.random.normal(ks[1], (C, C, 3), jnp.float32)
    w2 = 0.1 * jax.random.normal(ks[2], (C, C, 3), jnp.float32)
    g1 = 1.0 + 0.1 * jax.random.normal(ks[3], (C,), jnp.float32)
    be1 = 0.1 * jax.random.normal(ks[4], (C,), jnp.float32)
    m1 = 0.1 * jax.random.normal(ks[5], (C,), jnp.float32)
    v1 = 0.5 + jax.random.uniform(ks[6], (C,), jnp.float32)
    g2 = 1.0 + 0.1 * jax.random.normal(ks[7], (C,), jnp.float32)
    be2 = 0.1 * jax.random.normal(ks[8], (C,), jnp.float32)
    m2 = 0.1 * jax.random.normal(ks[9], (C,), jnp.float32)
    v2 = 0.5 + jax.random.uniform(ks[10], (C,), jnp.float32)
    return (x, w1, w2, g1, be1, m1, v1, g2, be2, m2, v2)


if __name__ == "__main__":
    key = jax.random.PRNGKey(0)
    k1, k2 = jax.random.split(key)

    # Case 1: single L tile, f32 compute.
    args = make_case(k1, 2, 8, 16)
    out = jax.block_until_ready(basic_block_1d(*args))
    ref = reference(*args)
    assert out.shape == (2, 8, 16)
    np.testing.assert_allclose(np.asarray(out), np.asarray(ref),
                               rtol=5e-4, atol=5e-4)

    # Case 2: multi-tile L axis with remainder padding (L=40, TL=16 -> 3 tiles).
    args2 = make_case(k2, 2, 8, 40)
    out2 = jax.block_until_ready(basic_block_1d(*args2, block_l=16))
    ref2 = reference(*args2)
    np.testing.assert_allclose(np.asarray(out2), np.asarray(ref2),
                               rtol=5e-4, atol=5e-4)

    # Case 3: bf16 operands end-to-end (v6e/v7x path); accumulation stays f32.
    out3 = jax.block_until_ready(
        basic_block_1d(*args, compute_dtype=jnp.bfloat16))
    np.testing.assert_allclose(np.asarray(out3), np.asarray(ref),
                               rtol=5e-2, atol=5e-2)

    print("KERNEL_OK")
</pallas_src>

<mosaic_0001>
module attributes {stable_mosaic.version = 11 : i64} {
  func.func @_basic_block_kernel(%arg0: i32, %arg1: i32, %arg2: memref<1x1x20x128xf32, #tpu.memory_space<vmem>>, %arg3: memref<3x128x128xf32, #tpu.memory_space<vmem>>, %arg4: memref<3x128x128xf32, #tpu.memory_space<vmem>>, %arg5: memref<1x128xf32, #tpu.memory_space<vmem>>, %arg6: memref<1x128xf32, #tpu.memory_space<vmem>>, %arg7: memref<1x16x128xf32, #tpu.memory_space<vmem>>, %arg8: memref<18x128xf32, #tpu.memory_space<vmem>>) attributes {dimension_semantics = [#tpu.dimension_semantics<parallel>, #tpu.dimension_semantics<parallel>], iteration_bounds = array<i64: 2, 1>, scalar_prefetch = 0 : i64, scratch_operands = 1 : i64, tpu.core_type = #tpu.core_type<tc>, window_params = [{transform_indices = @transform_0, window_bounds = array<i64: 1, 1, 20, 128>}, {pipeline_mode = #tpu.pipeline_mode<synchronous>, transform_indices = @transform_1, window_bounds = array<i64: 3, 128, 128>}, {pipeline_mode = #tpu.pipeline_mode<synchronous>, transform_indices = @transform_2, window_bounds = array<i64: 3, 128, 128>}, {pipeline_mode = #tpu.pipeline_mode<synchronous>, transform_indices = @transform_3, window_bounds = array<i64: 1, 128>}, {pipeline_mode = #tpu.pipeline_mode<synchronous>, transform_indices = @transform_4, window_bounds = array<i64: 1, 128>}, {transform_indices = @transform_5, window_bounds = array<i64: 1, 16, 128>}]} {
    %c0 = arith.constant 0 : index
    %c0_0 = arith.constant 0 : index
    %c0_1 = arith.constant 0 : index
    %c0_2 = arith.constant 0 : index
    %0 = vector.load %arg2[%c0, %c0_0, %c0_1, %c0_2] : memref<1x1x20x128xf32, #tpu.memory_space<vmem>>, vector<1x1x18x128xf32>
    %1 = vector.shape_cast %0 : vector<1x1x18x128xf32> to vector<18x128xf32>
    %c0_3 = arith.constant 0 : index
    %c0_4 = arith.constant 0 : index
    %c0_5 = arith.constant 0 : index
    %2 = vector.load %arg3[%c0_3, %c0_4, %c0_5] : memref<3x128x128xf32, #tpu.memory_space<vmem>>, vector<1x128x128xf32>
    %3 = vector.shape_cast %2 : vector<1x128x128xf32> to vector<128x128xf32>
    %cst = arith.constant dense<0.000000e+00> : vector<18x128xf32>
    %4 = tpu.matmul %1, %3, %cst {dimension_numbers = #tpu.dot_dimension_numbers<[1], [0], [0], [1], [0, 0, 1, 1], [], []>} : vector<18x128xf32>, vector<128x128xf32>, vector<18x128xf32> -> vector<18x128xf32>
    %c0_6 = arith.constant 0 : index
    %c0_7 = arith.constant 0 : index
    %c1 = arith.constant 1 : index
    %c0_8 = arith.constant 0 : index
    %5 = vector.load %arg2[%c0_6, %c0_7, %c1, %c0_8] : memref<1x1x20x128xf32, #tpu.memory_space<vmem>>, vector<1x1x18x128xf32>
    %6 = vector.shape_cast %5 : vector<1x1x18x128xf32> to vector<18x128xf32>
    %c1_9 = arith.constant 1 : index
    %c0_10 = arith.constant 0 : index
    %c0_11 = arith.constant 0 : index
    %7 = vector.load %arg3[%c1_9, %c0_10, %c0_11] : memref<3x128x128xf32, #tpu.memory_space<vmem>>, vector<1x128x128xf32>
    %8 = vector.shape_cast %7 : vector<1x128x128xf32> to vector<128x128xf32>
    %cst_12 = arith.constant dense<0.000000e+00> : vector<18x128xf32>
    %9 = tpu.matmul %6, %8, %cst_12 {dimension_numbers = #tpu.dot_dimension_numbers<[1], [0], [0], [1], [0, 0, 1, 1], [], []>} : vector<18x128xf32>, vector<128x128xf32>, vector<18x128xf32> -> vector<18x128xf32>
    %10 = arith.addf %4, %9 : vector<18x128xf32>
    %c0_13 = arith.constant 0 : index
    %c0_14 = arith.constant 0 : index
    %c2 = arith.constant 2 : index
    %c0_15 = arith.constant 0 : index
    %11 = vector.load %arg2[%c0_13, %c0_14, %c2, %c0_15] : memref<1x1x20x128xf32, #tpu.memory_space<vmem>>, vector<1x1x18x128xf32>
    %12 = vector.shape_cast %11 : vector<1x1x18x128xf32> to vector<18x128xf32>
    %c2_16 = arith.constant 2 : index
    %c0_17 = arith.constant 0 : index
    %c0_18 = arith.constant 0 : index
    %13 = vector.load %arg3[%c2_16, %c0_17, %c0_18] : memref<3x128x128xf32, #tpu.memory_space<vmem>>, vector<1x128x128xf32>
    %14 = vector.shape_cast %13 : vector<1x128x128xf32> to vector<128x128xf32>
    %cst_19 = arith.constant dense<0.000000e+00> : vector<18x128xf32>
    %15 = tpu.matmul %12, %14, %cst_19 {dimension_numbers = #tpu.dot_dimension_numbers<[1], [0], [0], [1], [0, 0, 1, 1], [], []>} : vector<18x128xf32>, vector<128x128xf32>, vector<18x128xf32> -> vector<18x128xf32>
    %16 = arith.addf %10, %15 : vector<18x128xf32>
    %c0_20 = arith.constant 0 : index
    %c0_21 = arith.constant 0 : index
    %17 = vector.load %arg5[%c0_20, %c0_21] : memref<1x128xf32, #tpu.memory_space<vmem>>, vector<1x128xf32>
    %18 = vector.broadcast %17 : vector<1x128xf32> to vector<18x128xf32>
    %19 = arith.addf %16, %18 : vector<18x128xf32>
    %cst_22 = arith.constant 0.000000e+00 : f32
    %20 = vector.broadcast %cst_22 : f32 to vector<18x128xf32>
    %21 = arith.maximumf %19, %20 : vector<18x128xf32>
    %22 = tpu.iota {dimensions = array<i32: 0>} : vector<18x1xi32>
    %c16_i32 = arith.constant 16 : i32
    %23 = arith.muli %arg1, %c16_i32 : i32
    %24 = vector.broadcast %23 : i32 to vector<18x1xi32>
    %25 = arith.addi %24, %22 : vector<18x1xi32>
    %c1_i32 = arith.constant 1 : i32
    %26 = vector.broadcast %c1_i32 : i32 to vector<18x1xi32>
    %27 = arith.subi %25, %26 : vector<18x1xi32>
    %c0_i32 = arith.constant 0 : i32
    %28 = vector.broadcast %c0_i32 : i32 to vector<18x1xi32>
    %29 = arith.cmpi sge, %27, %28 : vector<18x1xi32>
    %c16_i32_23 = arith.constant 16 : i32
    %30 = vector.broadcast %c16_i32_23 : i32 to vector<18x1xi32>
    %31 = arith.cmpi slt, %27, %30 : vector<18x1xi32>
    %32 = arith.andi %29, %31 : vector<18x1xi1>
    %cst_24 = arith.constant 0.000000e+00 : f32
    %33 = vector.shape_cast %32 : vector<18x1xi1> to vector<18x1xi1>
    %34 = vector.broadcast %33 : vector<18x1xi1> to vector<18x128xi1>
    %35 = vector.broadcast %cst_24 : f32 to vector<18x128xf32>
    %36 = arith.select %34, %21, %35 : vector<18x128xi1>, vector<18x128xf32>
    %c0_25 = arith.constant 0 : index
    %c0_26 = arith.constant 0 : index
    %37 = vector.load %arg8[%c0_25, %c0_26] : memref<18x128xf32, #tpu.memory_space<vmem>>, vector<18x128xf32>
    tpu.vector_store %arg8[%c0_25, %c0_26], %36 {strides = array<i32>} : memref<18x128xf32, #tpu.memory_space<vmem>>, vector<18x128xf32>,
    %c0_27 = arith.constant 0 : index
    %c0_28 = arith.constant 0 : index
    %38 = vector.load %arg8[%c0_27, %c0_28] : memref<18x128xf32, #tpu.memory_space<vmem>>, vector<16x128xf32>
    %c0_29 = arith.constant 0 : index
    %c0_30 = arith.constant 0 : index
    %c0_31 = arith.constant 0 : index
    %39 = vector.load %arg4[%c0_29, %c0_30, %c0_31] : memref<3x128x128xf32, #tpu.memory_space<vmem>>, vector<1x128x128xf32>
    %40 = vector.shape_cast %39 : vector<1x128x128xf32> to vector<128x128xf32>
    %cst_32 = arith.constant dense<0.000000e+00> : vector<16x128xf32>
    %41 = tpu.matmul %38, %40, %cst_32 {dimension_numbers = #tpu.dot_dimension_numbers<[1], [0], [0], [1], [0, 0, 1, 1], [], []>} : vector<16x128xf32>, vector<128x128xf32>, vector<16x128xf32> -> vector<16x128xf32>
    %c1_33 = arith.constant 1 : index
    %c0_34 = arith.constant 0 : index
    %42 = vector.load %arg8[%c1_33, %c0_34] : memref<18x128xf32, #tpu.memory_space<vmem>>, vector<16x128xf32>
    %c1_35 = arith.constant 1 : index
    %c0_36 = arith.constant 0 : index
    %c0_37 = arith.constant 0 : index
    %43 = vector.load %arg4[%c1_35, %c0_36, %c0_37] : memref<3x128x128xf32, #tpu.memory_space<vmem>>, vector<1x128x128xf32>
    %44 = vector.shape_cast %43 : vector<1x128x128xf32> to vector<128x128xf32>
    %cst_38 = arith.constant dense<0.000000e+00> : vector<16x128xf32>
    %45 = tpu.matmul %42, %44, %cst_38 {dimension_numbers = #tpu.dot_dimension_numbers<[1], [0], [0], [1], [0, 0, 1, 1], [], []>} : vector<16x128xf32>, vector<128x128xf32>, vector<16x128xf32> -> vector<16x128xf32>
    %46 = arith.addf %41, %45 : vector<16x128xf32>
    %c2_39 = arith.constant 2 : index
    %c0_40 = arith.constant 0 : index
    %47 = vector.load %arg8[%c2_39, %c0_40] : memref<18x128xf32, #tpu.memory_space<vmem>>, vector<16x128xf32>
    %c2_41 = arith.constant 2 : index
    %c0_42 = arith.constant 0 : index
    %c0_43 = arith.constant 0 : index
    %48 = vector.load %arg4[%c2_41, %c0_42, %c0_43] : memref<3x128x128xf32, #tpu.memory_space<vmem>>, vector<1x128x128xf32>
    %49 = vector.shape_cast %48 : vector<1x128x128xf32> to vector<128x128xf32>
    %cst_44 = arith.constant dense<0.000000e+00> : vector<16x128xf32>
    %50 = tpu.matmul %47, %49, %cst_44 {dimension_numbers = #tpu.dot_dimension_numbers<[1], [0], [0], [1], [0, 0, 1, 1], [], []>} : vector<16x128xf32>, vector<128x128xf32>, vector<16x128xf32> -> vector<16x128xf32>
    %51 = arith.addf %46, %50 : vector<16x128xf32>
    %c0_45 = arith.constant 0 : index
    %c0_46 = arith.constant 0 : index
    %c2_47 = arith.constant 2 : index
    %c0_48 = arith.constant 0 : index
    %52 = vector.load %arg2[%c0_45, %c0_46, %c2_47, %c0_48] : memref<1x1x20x128xf32, #tpu.memory_space<vmem>>, vector<1x1x16x128xf32>
    %53 = vector.shape_cast %52 : vector<1x1x16x128xf32> to vector<16x128xf32>
    %c0_49 = arith.constant 0 : index
    %c0_50 = arith.constant 0 : index
    %54 = vector.load %arg6[%c0_49, %c0_50] : memref<1x128xf32, #tpu.memory_space<vmem>>, vector<1x128xf32>
    %55 = vector.broadcast %54 : vector<1x128xf32> to vector<16x128xf32>
    %56 = arith.addf %51, %55 : vector<16x128xf32>
    %57 = arith.addf %56, %53 : vector<16x128xf32>
    %cst_51 = arith.constant 0.000000e+00 : f32
    %58 = vector.broadcast %cst_51 : f32 to vector<16x128xf32>
    %59 = arith.maximumf %57, %58 : vector<16x128xf32>
    %c0_52 = arith.constant 0 : index
    %c0_53 = arith.constant 0 : index
    %c0_54 = arith.constant 0 : index
    %60 = vector.load %arg7[%c0_52, %c0_53, %c0_54] : memref<1x16x128xf32, #tpu.memory_space<vmem>>, vector<1x16x128xf32>
    %61 = vector.shape_cast %60 : vector<1x16x128xf32> to vector<16x128xf32>
    %62 = vector.shape_cast %59 : vector<16x128xf32> to vector<1x16x128xf32>
    tpu.vector_store %arg7[%c0_52, %c0_53, %c0_54], %62 {strides = array<i32>} : memref<1x16x128xf32, #tpu.memory_space<vmem>>, vector<1x16x128xf32>,
    return
  }
  func.func @transform_0(%arg0: i32, %arg1: i32) -> (i32, i32, i32, i32) {
    %c0_i32 = arith.constant 0 : i32
    %c0_i32_0 = arith.constant 0 : i32
    %c0_i32_1 = arith.constant 0 : i32
    return %arg0, %arg1, %c0_i32, %c0_i32_0 : i32, i32, i32, i32
  }
  func.func @transform_1(%arg0: i32, %arg1: i32) -> (i32, i32, i32) {
    %c0_i32 = arith.constant 0 : i32
    %c0_i32_0 = arith.constant 0 : i32
    %c0_i32_1 = arith.constant 0 : i32
    %c0_i32_2 = arith.constant 0 : i32
    return %c0_i32, %c0_i32_0, %c0_i32_1 : i32, i32, i32
  }
  func.func @transform_2(%arg0: i32, %arg1: i32) -> (i32, i32, i32) {
    %c0_i32 = arith.constant 0 : i32
    %c0_i32_0 = arith.constant 0 : i32
    %c0_i32_1 = arith.constant 0 : i32
    %c0_i32_2 = arith.constant 0 : i32
    return %c0_i32, %c0_i32_0, %c0_i32_1 : i32, i32, i32
  }
  func.func @transform_3(%arg0: i32, %arg1: i32) -> (i32, i32) {
    %c0_i32 = arith.constant 0 : i32
    %c0_i32_0 = arith.constant 0 : i32
    %c0_i32_1 = arith.constant 0 : i32
    return %c0_i32, %c0_i32_0 : i32, i32
  }
  func.func @transform_4(%arg0: i32, %arg1: i32) -> (i32, i32) {
    %c0_i32 = arith.constant 0 : i32
    %c0_i32_0 = arith.constant 0 : i32
    %c0_i32_1 = arith.constant 0 : i32
    return %c0_i32, %c0_i32_0 : i32, i32
  }
  func.func @transform_5(%arg0: i32, %arg1: i32) -> (i32, i32, i32) {
    %c0_i32 = arith.constant 0 : i32
    %c0_i32_0 = arith.constant 0 : i32
    return %arg0, %arg1, %c0_i32 : i32, i32, i32
  }
}

module attributes {stable_mosaic.version = 11 : i64} {
  func.func @_basic_block_kernel(%arg0: i32, %arg1: i32, %arg2: memref<1x1x20x128xf32, #tpu.memory_space<vmem>>, %arg3: memref<3x128x128xf32, #tpu.memory_space<vmem>>, %arg4: memref<3x128x128xf32, #tpu.memory_space<vmem>>, %arg5: memref<1x128xf32, #tpu.memory_space<vmem>>, %arg6: memref<1x128xf32, #tpu.memory_space<vmem>>, %arg7: memref<1x16x128xf32, #tpu.memory_space<vmem>>, %arg8: memref<18x128xf32, #tpu.memory_space<vmem>>) attributes {dimension_semantics = [#tpu.dimension_semantics<parallel>, #tpu.dimension_semantics<parallel>], iteration_bounds = array<i64: 2, 1>, scalar_prefetch = 0 : i64, scratch_operands = 1 : i64, tpu.core_type = #tpu.core_type<tc>, window_params = [{transform_indices = @transform_0, window_bounds = array<i64: 1, 1, 20, 128>}, {pipeline_mode = #tpu.pipeline_mode<synchronous>, transform_indices = @transform_1, window_bounds = array<i64: 3, 128, 128>}, {pipeline_mode = #tpu.pipeline_mode<synchronous>, transform_indices = @transform_2, window_bounds = array<i64: 3, 128, 128>}, {pipeline_mode = #tpu.pipeline_mode<synchronous>, transform_indices = @transform_3, window_bounds = array<i64: 1, 128>}, {pipeline_mode = #tpu.pipeline_mode<synchronous>, transform_indices = @transform_4, window_bounds = array<i64: 1, 128>}, {transform_indices = @transform_5, window_bounds = array<i64: 1, 16, 128>}]} {
    %c0 = arith.constant 0 : index
    %c0_0 = arith.constant 0 : index
    %c0_1 = arith.constant 0 : index
    %c0_2 = arith.constant 0 : index
    %0 = vector.load %arg2[%c0, %c0_0, %c0_1, %c0_2] : memref<1x1x20x128xf32, #tpu.memory_space<vmem>>, vector<1x1x18x128xf32>
    %1 = vector.shape_cast %0 : vector<1x1x18x128xf32> to vector<18x128xf32>
    %c0_3 = arith.constant 0 : index
    %c0_4 = arith.constant 0 : index
    %c0_5 = arith.constant 0 : index
    %2 = vector.load %arg3[%c0_3, %c0_4, %c0_5] : memref<3x128x128xf32, #tpu.memory_space<vmem>>, vector<1x128x128xf32>
    %3 = vector.shape_cast %2 : vector<1x128x128xf32> to vector<128x128xf32>
    %cst = arith.constant dense<0.000000e+00> : vector<18x128xf32>
    %4 = tpu.matmul %1, %3, %cst {dimension_numbers = #tpu.dot_dimension_numbers<[1], [0], [0], [1], [0, 0, 1, 1], [], []>} : vector<18x128xf32>, vector<128x128xf32>, vector<18x128xf32> -> vector<18x128xf32>
    %c0_6 = arith.constant 0 : index
    %c0_7 = arith.constant 0 : index
    %c1 = arith.constant 1 : index
    %c0_8 = arith.constant 0 : index
    %5 = vector.load %arg2[%c0_6, %c0_7, %c1, %c0_8] : memref<1x1x20x128xf32, #tpu.memory_space<vmem>>, vector<1x1x18x128xf32>
    %6 = vector.shape_cast %5 : vector<1x1x18x128xf32> to vector<18x128xf32>
    %c1_9 = arith.constant 1 : index
    %c0_10 = arith.constant 0 : index
    %c0_11 = arith.constant 0 : index
    %7 = vector.load %arg3[%c1_9, %c0_10, %c0_11] : memref<3x128x128xf32, #tpu.memory_space<vmem>>, vector<1x128x128xf32>
    %8 = vector.shape_cast %7 : vector<1x128x128xf32> to vector<128x128xf32>
    %cst_12 = arith.constant dense<0.000000e+00> : vector<18x128xf32>
    %9 = tpu.matmul %6, %8, %cst_12 {dimension_numbers = #tpu.dot_dimension_numbers<[1], [0], [0], [1], [0, 0, 1, 1], [], []>} : vector<18x128xf32>, vector<128x128xf32>, vector<18x128xf32> -> vector<18x128xf32>
    %10 = arith.addf %4, %9 : vector<18x128xf32>
    %c0_13 = arith.constant 0 : index
    %c0_14 = arith.constant 0 : index
    %c2 = arith.constant 2 : index
    %c0_15 = arith.constant 0 : index
    %11 = vector.load %arg2[%c0_13, %c0_14, %c2, %c0_15] : memref<1x1x20x128xf32, #tpu.memory_space<vmem>>, vector<1x1x18x128xf32>
    %12 = vector.shape_cast %11 : vector<1x1x18x128xf32> to vector<18x128xf32>
    %c2_16 = arith.constant 2 : index
    %c0_17 = arith.constant 0 : index
    %c0_18 = arith.constant 0 : index
    %13 = vector.load %arg3[%c2_16, %c0_17, %c0_18] : memref<3x128x128xf32, #tpu.memory_space<vmem>>, vector<1x128x128xf32>
    %14 = vector.shape_cast %13 : vector<1x128x128xf32> to vector<128x128xf32>
    %cst_19 = arith.constant dense<0.000000e+00> : vector<18x128xf32>
    %15 = tpu.matmul %12, %14, %cst_19 {dimension_numbers = #tpu.dot_dimension_numbers<[1], [0], [0], [1], [0, 0, 1, 1], [], []>} : vector<18x128xf32>, vector<128x128xf32>, vector<18x128xf32> -> vector<18x128xf32>
    %16 = arith.addf %10, %15 : vector<18x128xf32>
    %c0_20 = arith.constant 0 : index
    %c0_21 = arith.constant 0 : index
    %17 = vector.load %arg5[%c0_20, %c0_21] : memref<1x128xf32, #tpu.memory_space<vmem>>, vector<1x128xf32>
    %18 = vector.broadcast %17 : vector<1x128xf32> to vector<18x128xf32>
    %19 = arith.addf %16, %18 : vector<18x128xf32>
    %cst_22 = arith.constant 0.000000e+00 : f32
    %20 = vector.broadcast %cst_22 : f32 to vector<18x128xf32>
    %21 = arith.maximumf %19, %20 : vector<18x128xf32>
    %22 = tpu.iota {dimensions = array<i32: 0>} : vector<18x1xi32>
    %c16_i32 = arith.constant 16 : i32
    %23 = arith.muli %arg1, %c16_i32 : i32
    %24 = vector.broadcast %23 : i32 to vector<18x1xi32>
    %25 = arith.addi %24, %22 : vector<18x1xi32>
    %c1_i32 = arith.constant 1 : i32
    %26 = vector.broadcast %c1_i32 : i32 to vector<18x1xi32>
    %27 = arith.subi %25, %26 : vector<18x1xi32>
    %c0_i32 = arith.constant 0 : i32
    %28 = vector.broadcast %c0_i32 : i32 to vector<18x1xi32>
    %29 = arith.cmpi sge, %27, %28 : vector<18x1xi32>
    %c16_i32_23 = arith.constant 16 : i32
    %30 = vector.broadcast %c16_i32_23 : i32 to vector<18x1xi32>
    %31 = arith.cmpi slt, %27, %30 : vector<18x1xi32>
    %32 = arith.andi %29, %31 : vector<18x1xi1>
    %cst_24 = arith.constant 0.000000e+00 : f32
    %33 = vector.shape_cast %32 : vector<18x1xi1> to vector<18x1xi1>
    %34 = vector.broadcast %33 : vector<18x1xi1> to vector<18x128xi1>
    %35 = vector.broadcast %cst_24 : f32 to vector<18x128xf32>
    %36 = arith.select %34, %21, %35 : vector<18x128xi1>, vector<18x128xf32>
    %c0_25 = arith.constant 0 : index
    %c0_26 = arith.constant 0 : index
    %37 = vector.load %arg8[%c0_25, %c0_26] : memref<18x128xf32, #tpu.memory_space<vmem>>, vector<18x128xf32>
    tpu.vector_store %arg8[%c0_25, %c0_26], %36 {strides = array<i32>} : memref<18x128xf32, #tpu.memory_space<vmem>>, vector<18x128xf32>,
    %c0_27 = arith.constant 0 : index
    %c0_28 = arith.constant 0 : index
    %38 = vector.load %arg8[%c0_27, %c0_28] : memref<18x128xf32, #tpu.memory_space<vmem>>, vector<16x128xf32>
    %c0_29 = arith.constant 0 : index
    %c0_30 = arith.constant 0 : index
    %c0_31 = arith.constant 0 : index
    %39 = vector.load %arg4[%c0_29, %c0_30, %c0_31] : memref<3x128x128xf32, #tpu.memory_space<vmem>>, vector<1x128x128xf32>
    %40 = vector.shape_cast %39 : vector<1x128x128xf32> to vector<128x128xf32>
    %cst_32 = arith.constant dense<0.000000e+00> : vector<16x128xf32>
    %41 = tpu.matmul %38, %40, %cst_32 {dimension_numbers = #tpu.dot_dimension_numbers<[1], [0], [0], [1], [0, 0, 1, 1], [], []>} : vector<16x128xf32>, vector<128x128xf32>, vector<16x128xf32> -> vector<16x128xf32>
    %c1_33 = arith.constant 1 : index
    %c0_34 = arith.constant 0 : index
    %42 = vector.load %arg8[%c1_33, %c0_34] : memref<18x128xf32, #tpu.memory_space<vmem>>, vector<16x128xf32>
    %c1_35 = arith.constant 1 : index
    %c0_36 = arith.constant 0 : index
    %c0_37 = arith.constant 0 : index
    %43 = vector.load %arg4[%c1_35, %c0_36, %c0_37] : memref<3x128x128xf32, #tpu.memory_space<vmem>>, vector<1x128x128xf32>
    %44 = vector.shape_cast %43 : vector<1x128x128xf32> to vector<128x128xf32>
    %cst_38 = arith.constant dense<0.000000e+00> : vector<16x128xf32>
    %45 = tpu.matmul %42, %44, %cst_38 {dimension_numbers = #tpu.dot_dimension_numbers<[1], [0], [0], [1], [0, 0, 1, 1], [], []>} : vector<16x128xf32>, vector<128x128xf32>, vector<16x128xf32> -> vector<16x128xf32>
    %46 = arith.addf %41, %45 : vector<16x128xf32>
    %c2_39 = arith.constant 2 : index
    %c0_40 = arith.constant 0 : index
    %47 = vector.load %arg8[%c2_39, %c0_40] : memref<18x128xf32, #tpu.memory_space<vmem>>, vector<16x128xf32>
    %c2_41 = arith.constant 2 : index
    %c0_42 = arith.constant 0 : index
    %c0_43 = arith.constant 0 : index
    %48 = vector.load %arg4[%c2_41, %c0_42, %c0_43] : memref<3x128x128xf32, #tpu.memory_space<vmem>>, vector<1x128x128xf32>
    %49 = vector.shape_cast %48 : vector<1x128x128xf32> to vector<128x128xf32>
    %cst_44 = arith.constant dense<0.000000e+00> : vector<16x128xf32>
    %50 = tpu.matmul %47, %49, %cst_44 {dimension_numbers = #tpu.dot_dimension_numbers<[1], [0], [0], [1], [0, 0, 1, 1], [], []>} : vector<16x128xf32>, vector<128x128xf32>, vector<16x128xf32> -> vector<16x128xf32>
    %51 = arith.addf %46, %50 : vector<16x128xf32>
    %c0_45 = arith.constant 0 : index
    %c0_46 = arith.constant 0 : index
    %c2_47 = arith.constant 2 : index
    %c0_48 = arith.constant 0 : index
    %52 = vector.load %arg2[%c0_45, %c0_46, %c2_47, %c0_48] : memref<1x1x20x128xf32, #tpu.memory_space<vmem>>, vector<1x1x16x128xf32>
    %53 = vector.shape_cast %52 : vector<1x1x16x128xf32> to vector<16x128xf32>
    %c0_49 = arith.constant 0 : index
    %c0_50 = arith.constant 0 : index
    %54 = vector.load %arg6[%c0_49, %c0_50] : memref<1x128xf32, #tpu.memory_space<vmem>>, vector<1x128xf32>
    %55 = vector.broadcast %54 : vector<1x128xf32> to vector<16x128xf32>
    %56 = arith.addf %51, %55 : vector<16x128xf32>
    %57 = arith.addf %56, %53 : vector<16x128xf32>
    %cst_51 = arith.constant 0.000000e+00 : f32
    %58 = vector.broadcast %cst_51 : f32 to vector<16x128xf32>
    %59 = arith.maximumf %57, %58 : vector<16x128xf32>
    %c0_52 = arith.constant 0 : index
    %c0_53 = arith.constant 0 : index
    %c0_54 = arith.constant 0 : index
    %60 = vector.load %arg7[%c0_52, %c0_53, %c0_54] : memref<1x16x128xf32, #tpu.memory_space<vmem>>, vector<1x16x128xf32>
    %61 = vector.shape_cast %60 : vector<1x16x128xf32> to vector<16x128xf32>
    %62 = vector.shape_cast %59 : vector<16x128xf32> to vector<1x16x128xf32>
    tpu.vector_store %arg7[%c0_52, %c0_53, %c0_54], %62 {strides = array<i32>} : memref<1x16x128xf32, #tpu.memory_space<vmem>>, vector<1x16x128xf32>,
    return
  }
  func.func @transform_0(%arg0: i32, %arg1: i32) -> (i32, i32, i32, i32) {
    %c0_i32 = arith.constant 0 : i32
    %c0_i32_0 = arith.constant 0 : i32
    %c0_i32_1 = arith.constant 0 : i32
    return %arg0, %arg1, %c0_i32, %c0_i32_0 : i32, i32, i32, i32
  }
  func.func @transform_1(%arg0: i32, %arg1: i32) -> (i32, i32, i32) {
    %c0_i32 = arith.constant 0 : i32
    %c0_i32_0 = arith.constant 0 : i32
    %c0_i32_1 = arith.constant 0 : i32
    %c0_i32_2 = arith.constant 0 : i32
    return %c0_i32, %c0_i32_0, %c0_i32_1 : i32, i32, i32
  }
  func.func @transform_2(%arg0: i32, %arg1: i32) -> (i32, i32, i32) {
    %c0_i32 = arith.constant 0 : i32
    %c0_i32_0 = arith.constant 0 : i32
    %c0_i32_1 = arith.constant 0 : i32
    %c0_i32_2 = arith.constant 0 : i32
    return %c0_i32, %c0_i32_0, %c0_i32_1 : i32, i32, i32
  }
  func.func @transform_3(%arg0: i32, %arg1: i32) -> (i32, i32) {
    %c0_i32 = arith.constant 0 : i32
    %c0_i32_0 = arith.constant 0 : i32
    %c0_i32_1 = arith.constant 0 : i32
    return %c0_i32, %c0_i32_0 : i32, i32
  }
  func.func @transform_4(%arg0: i32, %arg1: i32) -> (i32, i32) {
    %c0_i32 = arith.constant 0 : i32
    %c0_i32_0 = arith.constant 0 : i32
    %c0_i32_1 = arith.constant 0 : i32
    return %c0_i32, %c0_i32_0 : i32, i32
  }
  func.func @transform_5(%arg0: i32, %arg1: i32) -> (i32, i32, i32) {
    %c0_i32 = arith.constant 0 : i32
    %c0_i32_0 = arith.constant 0 : i32
    return %arg0, %arg1, %c0_i32 : i32, i32, i32
  }
}

</mosaic_0001>

<bundles_post_ra>
// kernel: tpu_custom_call.1
= control target key start
LH: loop header
LB: loop body
LE: loop exit
PB: predicated region body
PF: predicated region fallthrough
CT: control target
= control target key end

     0   :  { %10 = vsyncpa [#allocation4], 0  ;;  %s1921_s0 = inlined_call_operand.vmem [shape: f32[2,1,20,128], index: 0, kind: input, shape index: {}]   ;;  %s1922_s1 = inlined_call_operand.hbm [shape: f32[3,128,128], index: 1, kind: input, shape index: {}]   ;;  %s1923_s2 = inlined_call_operand.hbm [shape: f32[3,128,128], index: 2, kind: input, shape index: {}]   ;;  %s1924_s3 = inlined_call_operand.vmem [shape: f32[1,128], index: 3, kind: input, shape index: {}]   ;;  %s1925_s4 = inlined_call_operand.vmem [shape: f32[1,128], index: 4, kind: input, shape index: {}]   ;;  %s1926_s5 = inlined_call_operand.hbm [shape: f32[2,16,128], index: 5, kind: output, shape index: {}]  }
   0x1   :  { %11 = vsyncpa [#allocation7], 0 }
   0x2   :  { %12 = vsyncpa [#allocation5], 0 }
   0x3   :  { %14 = vsyncpa [#allocation5 + $0x1], 0  ;;  %s1672_s18 = smov 0   ;;  %s1674_s19 = smov 0  }
   0x4   :  { %s1676_s20 = smov 0   ;;  %s1678_s21 = smov 0  }
   0x5   :  { %s1680_s22 = smov 0   ;;  %s1682_s23 = smov 0  }
   0x6 LB: > { %s1050_s24 = sadd.s32 4294967295, %s1631_s23   ;;  %s1051_s25 = sadd.s32 4294967294, %s1631_s23   ;;  %s1631_s23 = sphi %s1682_s23, %s20_s23   ;;  %s1627_s22 = sphi %s1680_s22, %s1939_s22   ;;  %s1623_s21 = sphi %s1678_s21, %s1938_s21   ;;  %s1619_s20 = sphi %s1676_s20, %s1937_s20   ;;  %s1615_s19 = sphi %s1674_s19, %s1936_s19   ;;  %s1611_s18 = sphi %s1672_s18, %s1935_s18  }
   0x7   : > { %s32_s26 = sadd.s32 1, %s1627_s22  ;;  %s153_s27 = sadd.s32 1, %s1619_s20 }
   0x8   : > { %p34_p0 = scmp.ge.s32.totalorder %s32_s26, 2  ;;  %p163_p1 = scmp.ne.s32.totalorder %s1619_s20, %s1615_s19 }
   0x9   : > { %p164_p2 = scmp.eq.s32.totalorder %s1050_s24, 1  ;;  %p169_p3 = scmp.ne.s32.totalorder %s1615_s19, %s1611_s18 }
   0xa   : > { %s1941_s26 = smov (%p34_p0, %s32_s26), 0  ;;  %p170_p5 = scmp.eq.s32.totalorder %s1051_s25, 1 }
   0xb   : > { %p1712_p4 = por %p164_p2, %p163_p1  ;;  %s148_s29 = ssub.s32 %s1627_s22, %s1941_s26 }
   0xc   : > { %p1052_p6 = scmp.ge.s32.totalorder %s1631_s23, 1  ;;  %p151_p7 = scmp.eq.s32.totalorder %s148_s29, 0 }
   0xd   : > { %s1928_s28 = scalar_select %p1712_p4, 1, 0 }
   0xe   : > { %p1719_p8 = por %p170_p5, %p169_p3  ;;  %p177_p9 = scmp.lt.s32.totalorder %s1631_s23, 3 }
   0xf   : > { %s1725_s6 = scalar_select %p151_p7, %s1619_s20, %s153_s27  }
  0x10   : > { %s1929_s30 = scalar_select %p1719_p8, 1, 0 }
  0x11   : > { %p1727_p10 = pnand %p1052_p6, %p177_p9  ;;  %p1731_p11 = scmp.eq.s32.totalorder %s1050_s24, 0 }
  0x12   : > { %s1633_s9 = smov [#allocation3]   ;;  %s1634_s12 = smov [#allocation6]  }
  0x13   : > { %p1422_p12 = pneg %p1727_p10  ;;  %s189_s10 = sshll.u32 %s1633_s9, 4  ;;  %s190_s10 = int_to_ptr.vmem [resolvable:$true] %s189_s10 }
  0x14   : > { %s202_s13 = sshll.u32 %s1634_s12, 4  ;;  %s1506_s14 = scalar_lea.vmem %s190_s10, 6144  ;;  %s203_s13 = int_to_ptr.vmem [resolvable:$true] %s202_s13 }
  0x15   : > { %p1739_p13 = pnand %p1731_p11, %p1422_p12  ;;  %p1507_p1 = scmp.ne.s32.totalorder %s190_s10, %s1506_s14 }
  0x16   : > { %p1514_p5 = scmp.lt.s32.totalorder %s190_s10, %s190_s10  ;;  %p1515_p6 = scmp.lt.s32.totalorder %s1506_s14, %s1506_s14 }
  0x17   : > { %p1497_p0 = pneg %p1739_p13 }
  0x18   : > { %p1516_p7 = por %p1515_p6, %p1514_p5 }
  0x19   : > { %p1509_p2 = pnand %p1507_p1, %p1497_p0 }
  0x1b   : > { %p1510_p3 = pneg %p1509_p2 }
  0x1d   : > { %p1517_p9 = pnand %p1516_p7, %p1510_p3 }
  0x1f   : > { %1520 = shalt.err (!%p1517_p9)
}
  0x20   : > { %s1635_s15 = smov 128   ;;  %s1636_s16 = smov 8  }
  0x21   : > { %1425 = dma.hbm_to_vmem [thread:$0]  (!%p1739_p13), %s1922_s1, 6144, %s190_s10, [#allocation4], %s1635_s15, %s1635_s15, %s1636_s16  }
  0x22   : > { %s1532_s25 = scalar_lea.vmem %s203_s13, 6144  ;;  %p1540_p8 = scmp.lt.s32.totalorder %s203_s13, %s203_s13 }
  0x23   : > { %p1533_p12 = scmp.ne.s32.totalorder %s203_s13, %s1532_s25  ;;  %p1541_p4 = scmp.lt.s32.totalorder %s1532_s25, %s1532_s25 }
  0x25   : > { %p1535_p1 = pnand %p1533_p12, %p1497_p0  ;;  %p1542_p5 = por %p1541_p4, %p1540_p8 }
  0x27   : > { %p1536_p2 = pneg %p1535_p1 }
  0x29   : > { %p1543_p3 = pnand %p1542_p5, %p1536_p2 }
  0x2b   : > { %1546 = shalt.err (!%p1543_p3)
}
  0x2c   : > { %1428 = dma.hbm_to_vmem [thread:$0]  (!%p1739_p13), %s1923_s2, 6144, %s203_s13, [#allocation7], %s1635_s15, %s1635_s15, %s1636_s16  }
  0x2d   : > { %236 = sbr.rel (%p1727_p10) target bundleno = 584 (0x248), region = 40 }
  0x32   : > { %1598 = dma.done.wait (%p1731_p11), [#allocation4], 6144  }
  0x33   : > { %1600 = vsyncadd (%p1731_p11), [#allocation4], 4294961152 }
  0x34   : > { %1602 = dma.done.wait (%p1731_p11), [#allocation7], 6144  }
  0x35   : > { %1604 = vsyncadd (%p1731_p11), [#allocation7], 4294961152  ;;  %v1637_v0 = vmov 0.0   ;;  %vm1638_vm0 = vmmov 0   ;;  %v320_v1 = vld [vmem:[#allocation3 + $0xf8] sm:$0xff]  ;;  %v319_v3 = vld [vmem:[#allocation3 + $0xf0] sm:$0xff] }
  0x36   : > { %1183 = vmatprep.subr.mxu0 %v1637_v0  ;;  %1224 = vmatprep.subr.mxu1 %v1637_v0  ;;  %v300_v2 = vld [vmem:[#allocation3 + $0x78] sm:$0xff]  ;;  %v299_v4 = vld [vmem:[#allocation3 + $0x70] sm:$0xff]  ;;  %v318_v5 = vld [vmem:[#allocation3 + $0xe8] sm:$0xff]  ;;  %p272_p4 = scmp.lt.s32.totalorder %s1623_s21, 1  ;;  %s269_s14 = sand.u32 1, %s1615_s19  }
  0x37   : > { %1215 = vmatprep.mubr.msk.f32.mxu0 %vm1638_vm0, %v1637_v0  ;;  %1256 = vmatprep.mubr.msk.f32.mxu1 %vm1638_vm0, %v1637_v0  ;;  %v298_v6 = vld [vmem:[#allocation3 + $0x68] sm:$0xff]  ;;  %v317_v7 = vld [vmem:[#allocation3 + $0xe0] sm:$0xff]  ;;  %v316_v9 = vld [vmem:[#allocation3 + $0xd8] sm:$0xff]  ;;  %s1059_s15 = sshll.u32 %s269_s14, 4  ;;  %s1071_s27 = sshll.u32 %s1623_s21, 8 }
  0x38   : > { %1184 = vmatpush3.msra.mxu0 %v320_v1  ;;  %1225 = vmatpush3.msra.mxu1 %v300_v2  ;;  %v297_v8 = vld [vmem:[#allocation3 + $0x60] sm:$0xff]  ;;  %v296_v10 = vld [vmem:[#allocation3 + $0x58] sm:$0xff]  ;;  %v315_v11 = vld [vmem:[#allocation3 + $0xd0] sm:$0xff]  ;;  %s273_s7 = scalar_select %p272_p4, %s1623_s21, 1 }
  0x39   : > { %1185 = vmatprep.subr.mxu0 %v1637_v0  ;;  %1226 = vmatprep.subr.mxu1 %v1637_v0  ;;  %v295_v12 = vld [vmem:[#allocation3 + $0x50] sm:$0xff]  ;;  %v314_v13 = vld [vmem:[#allocation3 + $0xc8] sm:$0xff]  ;;  %v313_v15 = vld [vmem:[#allocation3 + $0xc0] sm:$0xff]  ;;  %s271_s24 = scalar_lea.vmem [#allocation8], %s1059_s15  ;;  %s1876_s9 = scalar_lea.sflag [#allocation5], %s269_s14 }
  0x3a   : > { %1186 = vmatpush3.msra.mxu0 %v319_v3  ;;  %1227 = vmatpush3.msra.mxu1 %v299_v4  ;;  %v294_v14 = vld [vmem:[#allocation3 + $0x48] sm:$0xff]  ;;  %v293_v16 = vld [vmem:[#allocation3 + $0x40] sm:$0xff]  ;;  %v312_v17 = vld [vmem:[#allocation3 + $0xb8] sm:$0xff]  ;;  %s1411_s8 = smul.u32 24, %s273_s7  ;;  %s946_s25 = sshll.u32 %s271_s24, 4  ;;  %s1869_s25 = int_to_ptr.vmem [resolvable:$true] %s946_s25 }
  0x3b   : > { %1187 = vmatprep.subr.mxu0 %v1637_v0  ;;  %1228 = vmatprep.subr.mxu1 %v1637_v0  ;;  %v292_v18 = vld [vmem:[#allocation3 + $0x38] sm:$0xff]  ;;  %v311_v19 = vld [vmem:[#allocation3 + $0xb0] sm:$0xff]  ;;  %v310_v21 = vld [vmem:[#allocation3 + $0xa8] sm:$0xff]  ;;  %s1547_s10 = scalar_lea.vmem %s1869_s25, 256  ;;  %p1933_p10 = scmp.ne.s32.totalorder %s1928_s28, 0 }
  0x3c   : > { %1188 = vmatpush3.msra.mxu0 %v318_v5  ;;  %1229 = vmatpush3.msra.mxu1 %v298_v6  ;;  %v291_v20 = vld [vmem:[#allocation3 + $0x30] sm:$0xff]  ;;  %v290_v22 = vld [vmem:[#allocation3 + $0x28] sm:$0xff]  ;;  %v309_v23 = vld [vmem:[#allocation3 + $0xa0] sm:$0xff]  ;;  %s1808_s11 = scalar_lea.vmem %s1921_s0, %s1411_s8  ;;  %s1874_s8 = scalar_lea.hbm %s1926_s5, %s1071_s27 }
  0x3d   : > { %1189 = vmatprep.subr.mxu0 %v1637_v0  ;;  %1230 = vmatprep.subr.mxu1 %v1637_v0  ;;  %v289_v24 = vld [vmem:[#allocation3 + $0x20] sm:$0xff]  ;;  %v308_v25 = vld [vmem:[#allocation3 + $0x98] sm:$0xff]  ;;  %v307_v27 = vld [vmem:[#allocation3 + $0x90] sm:$0xff]  ;;  %p1548_p8 = scmp.ne.s32.totalorder %s1869_s25, %s1547_s10  ;;  %s1639_s21 = smov [#allocation8]  }
  0x3e   : > { %1190 = vmatpush3.msra.mxu0 %v317_v7  ;;  %1231 = vmatpush3.msra.mxu1 %v297_v8  ;;  %v288_v26 = vld [vmem:[#allocation3 + $0x18] sm:$0xff]  ;;  %v287_v28 = vld [vmem:[#allocation3 + $0x10] sm:$0xff]  ;;  %v306_v29 = vld [vmem:[#allocation3 + $0x88] sm:$0xff] }
  0x3f   : > { %1191 = vmatprep.subr.mxu0 %v1637_v0  ;;  %1232 = vmatprep.subr.mxu1 %v1637_v0  ;;  %v286_v30 = vld [vmem:[#allocation3 + $0x8] sm:$0xff]  ;;  %v305_v31 = vld [vmem:[#allocation3 + $0x80] sm:$0xff]  ;;  %v500_v35 = vld [vmem:[#allocation3 + $0x178] sm:$0xff]  ;;  %p1549_p11 = pnand %p1548_p8, %p1933_p10 }
  0x40   : > { %1192 = vmatpush3.msra.mxu0 %v316_v9  ;;  %1233 = vmatpush3.msra.mxu1 %v296_v10  ;;  %v285_v32 = vld [vmem:[#allocation3] sm:$0xff]  ;;  %v301_v33 = vld [vmem:[%s1808_s11 + $0x1] sm:$0xff]  ;;  %v302_v37 = vld [vmem:[%s1808_s11 + $0x9] sm:$0xff] }
  0x41   : > { %1193 = vmatprep.subr.mxu0 %v1637_v0  ;;  %1234 = vmatprep.subr.mxu1 %v1637_v0  ;;  %v282_v34 = vld [vmem:[%s1808_s11] sm:$0xff]  ;;  %v499_v36 = vld [vmem:[#allocation3 + $0x170] sm:$0xff]  ;;  %v497_v40 = vld [vmem:[#allocation3 + $0x160] sm:$0xff]  ;;  %p1550_p13 = pneg %p1549_p11 }
  0x42   : > { %1194 = vmatpush3.msra.mxu0 %v315_v11  ;;  %1235 = vmatpush3.msra.mxu1 %v295_v12  ;;  %v498_v38 = vld [vmem:[#allocation3 + $0x168] sm:$0xff]  ;;  %v283_v39 = vld [vmem:[%s1808_s11 + $0x8] sm:$0xff]  ;;  %v303_v41 = vld [vmem:[%s1808_s11 + $0x11] sm:$0x3] }
  0x43   : > { %1195 = vmatprep.subr.mxu0 %v1637_v0  ;;  %1236 = vmatprep.subr.mxu1 %v1637_v0  ;;  %v496_v42 = vld [vmem:[#allocation3 + $0x158] sm:$0xff]  ;;  %v495_v44 = vld [vmem:[#allocation3 + $0x150] sm:$0xff]  ;;  %v494_v45 = vld [vmem:[#allocation3 + $0x148] sm:$0xff] }
  0x44   : > { %1196 = vmatpush3.msra.mxu0 %v314_v13  ;;  %1237 = vmatpush3.msra.mxu1 %v294_v14  ;;  %v284_v43 = vld [vmem:[%s1808_s11 + $0x10] sm:$0x3]  ;;  %v493_v46 = vld [vmem:[#allocation3 + $0x140] sm:$0xff]  ;;  %v491_v48 = vld [vmem:[#allocation3 + $0x130] sm:$0xff] }
  0x45   : > { %1197 = vmatprep.subr.mxu0 %v1637_v0  ;;  %1238 = vmatprep.subr.mxu1 %v1637_v0  ;;  %v492_v47 = vld [vmem:[#allocation3 + $0x138] sm:$0xff]  ;;  %v490_v49 = vld [vmem:[#allocation3 + $0x128] sm:$0xff]  ;;  %v489_v50 = vld [vmem:[#allocation3 + $0x120] sm:$0xff] }
  0x46   : > { %1198 = vmatpush3.msra.mxu0 %v313_v15  ;;  %1239 = vmatpush3.msra.mxu1 %v293_v16  ;;  %v488_v51 = vld [vmem:[#allocation3 + $0x118] sm:$0xff]  ;;  %v487_v52 = vld [vmem:[#allocation3 + $0x110] sm:$0xff]  ;;  %v486_v53 = vld [vmem:[#allocation3 + $0x108] sm:$0xff] }
  0x47   : > { %1199 = vmatprep.subr.mxu0 %v1637_v0  ;;  %1240 = vmatprep.subr.mxu1 %v1637_v0  ;;  %v485_v54 = vld [vmem:[#allocation3 + $0x100] sm:$0xff]  ;;  %v1846_v55 = vld [vmem:[%s1808_s11 + $0x2] sm:$0xff]  ;;  %v1853_v56 = vld [vmem:[%s1808_s11 + $0xa] sm:$0xff] }
  0x48   : > { %1200 = vmatpush3.msra.mxu0 %v312_v17  ;;  %1241 = vmatpush3.msra.mxu1 %v292_v18  ;;  %v483_v57 = vld [vmem:[%s1808_s11 + $0x12] sm:$0x3]  ;;  %v646_v59 = vld [vmem:[#allocation6 + $0x70] sm:$0xff]  ;;  %v645_v61 = vld [vmem:[#allocation6 + $0x68] sm:$0xff]  ;;  %s1551_s11 = sshll.u32 %s1639_s21, 4  ;;  %s1552_s11 = int_to_ptr.vmem [resolvable:$false] %s1551_s11 }
  0x49   : > { %1201 = vmatprep.subr.mxu0 %v1637_v0  ;;  %1242 = vmatprep.subr.mxu1 %v1637_v0  ;;  %v647_v58 = vld [vmem:[#allocation6 + $0x78] sm:$0xff]  ;;  %v665_v62 = vld [vmem:[#allocation6 + $0xf0] sm:$0xff]  ;;  %v644_v63 = vld [vmem:[#allocation6 + $0x60] sm:$0xff]  ;;  %s1553_s12 = scalar_lea.vmem %s1552_s11, 512  ;;  %p1554_p0 = scmp.lt.s32.totalorder %s1869_s25, %s1552_s11 }
  0x4a   : > { %1202 = vmatpush3.msra.mxu0 %v311_v19  ;;  %1243 = vmatpush3.msra.mxu1 %v291_v20  ;;  %v666_v60 = vld [vmem:[#allocation6 + $0xf8] sm:$0xff]  ;;  %v664_v1 = vld [vmem:[#allocation6 + $0xe8] sm:$0xff]  ;;  %v663_v2 = vld [vmem:[#allocation6 + $0xe0] sm:$0xff]  ;;  %p1555_p6 = scmp.lt.s32.totalorder %s1553_s12, %s1547_s10 }
  0x4b   : > { %1203 = vmatprep.subr.mxu0 %v1637_v0  ;;  %1244 = vmatprep.subr.mxu1 %v1637_v0  ;;  %v642_v3 = vld [vmem:[#allocation6 + $0x50] sm:$0xff]  ;;  %v662_v4 = vld [vmem:[#allocation6 + $0xd8] sm:$0xff]  ;;  %v641_v5 = vld [vmem:[#allocation6 + $0x48] sm:$0xff] }
  0x4c   : > { %1204 = vmatpush3.msra.mxu0 %v310_v21  ;;  %1245 = vmatpush3.msra.mxu1 %v290_v22  ;;  %v640_v6 = vld [vmem:[#allocation6 + $0x40] sm:$0xff]  ;;  %v639_v7 = vld [vmem:[#allocation6 + $0x38] sm:$0xff]  ;;  %v638_v8 = vld [vmem:[#allocation6 + $0x30] sm:$0xff]  ;;  %p1556_p7 = por %p1555_p6, %p1554_p0 }
  0x4d   : > { %1205 = vmatprep.subr.mxu0 %v1637_v0  ;;  %1246 = vmatprep.subr.mxu1 %v1637_v0  ;;  %v637_v9 = vld [vmem:[#allocation6 + $0x28] sm:$0xff]  ;;  %v661_v10 = vld [vmem:[#allocation6 + $0xd0] sm:$0xff]  ;;  %v636_v11 = vld [vmem:[#allocation6 + $0x20] sm:$0xff] }
  0x4e   : > { %1206 = vmatpush3.msra.mxu0 %v309_v23  ;;  %1247 = vmatpush3.msra.mxu1 %v289_v24  ;;  %v660_v12 = vld [vmem:[#allocation6 + $0xc8] sm:$0xff]  ;;  %v635_v13 = vld [vmem:[#allocation6 + $0x18] sm:$0xff]  ;;  %v659_v14 = vld [vmem:[#allocation6 + $0xc0] sm:$0xff]  ;;  %p1557_p9 = pnand %p1556_p7, %p1550_p13 }
  0x4f   : > { %1207 = vmatprep.subr.mxu0 %v1637_v0  ;;  %1248 = vmatprep.subr.mxu1 %v1637_v0  ;;  %v634_v15 = vld [vmem:[#allocation6 + $0x10] sm:$0xff]  ;;  %v658_v16 = vld [vmem:[#allocation6 + $0xb8] sm:$0xff]  ;;  %v633_v17 = vld [vmem:[#allocation6 + $0x8] sm:$0xff] }
  0x50   : > { %1208 = vmatpush3.msra.mxu0 %v308_v25  ;;  %1249 = vmatpush3.msra.mxu1 %v288_v26  ;;  %v657_v18 = vld [vmem:[#allocation6 + $0xb0] sm:$0xff]  ;;  %v632_v19 = vld [vmem:[#allocation6] sm:$0xff]  ;;  %v656_v20 = vld [vmem:[#allocation6 + $0xa8] sm:$0xff] }
  0x51   : > { %1209 = vmatprep.subr.mxu0 %v1637_v0  ;;  %1250 = vmatprep.subr.mxu1 %v1637_v0  ;;  %v655_v21 = vld [vmem:[#allocation6 + $0xa0] sm:$0xff]  ;;  %v654_v22 = vld [vmem:[#allocation6 + $0x98] sm:$0xff]  ;;  %v653_v23 = vld [vmem:[#allocation6 + $0x90] sm:$0xff] }
  0x52   : > { %1210 = vmatpush3.msra.mxu0 %v307_v27  ;;  %1251 = vmatpush3.msra.mxu1 %v287_v28  ;;  %v652_v24 = vld [vmem:[#allocation6 + $0x88] sm:$0xff]  ;;  %v651_v25 = vld [vmem:[#allocation6 + $0x80] sm:$0xff]  ;;  %v835_v26 = vld [vmem:[#allocation6 + $0x178] sm:$0xff] }
  0x53   : > { %1211 = vmatprep.subr.mxu0 %v1637_v0  ;;  %1252 = vmatprep.subr.mxu1 %v1637_v0 }
  0x54   : > { %1212 = vmatpush3.msra.mxu0 %v306_v29  ;;  %1253 = vmatpush3.msra.mxu1 %v286_v30 }
  0x55   : > { %1213 = vmatprep.subr.mxu0 %v1637_v0  ;;  %1254 = vmatprep.subr.mxu1 %v1637_v0 }
  0x56   : > { %1214 = vmatpush3.msra.mxu0 %v305_v31  ;;  %1255 = vmatpush3.msra.mxu1 %v285_v32 }
  0x57   : > { %1216 = vmatmul.mubr.f32.vlgmr.msra.gmra.mxu0 %v301_v33  ;;  %1265 = vmatprep.subr.mxu0 %v1637_v0 }
  0x58   : > { %1257 = vmatmul.mubr.f32.vlgmr.msra.gmra.mxu1 %v282_v34  ;;  %1266 = vmatpush3.msra.mxu0 %v500_v35 }
  0x59   : > { %1267 = vmatprep.subr.mxu0 %v1637_v0  ;;  %1218 = vmatprep.mubr.msk.f32.mxu0 %vm1638_vm0, %v1637_v0 }
  0x5a   : > { %1268 = vmatpush3.msra.mxu0 %v499_v36  ;;  %1259 = vmatprep.mubr.msk.f32.mxu1 %vm1638_vm0, %v1637_v0 }
  0x5b   : > { %1269 = vmatprep.subr.mxu0 %v1637_v0  ;;  %1219 = vmatmul.mubr.f32.gmra.mxu0 %v302_v37 }
  0x5c   : > { %1270 = vmatpush3.msra.mxu0 %v498_v38  ;;  %1260 = vmatmul.mubr.f32.gmra.mxu1 %v283_v39  ;;  %v597_v39 = vlaneseq }
  0x5d   : > { %1271 = vmatprep.subr.mxu0 %v1637_v0  ;;  %1221 = vmatprep.mubr.msk.f32.mxu0 %vm1638_vm0, %v1637_v0 }
  0x5e   : > { %1272 = vmatpush3.msra.mxu0 %v497_v40  ;;  %1262 = vmatprep.mubr.msk.f32.mxu1 %vm1638_vm0, %v1637_v0  ;;  %v598_v40 = vshrl.u32 %v597_v39, 7 }
  0x5f   : > { %1273 = vmatprep.subr.mxu0 %v1637_v0  ;;  %1222 = vmatmul.mubr.f32.gmra.mxu0 %v303_v41 }
  0x60   : > { %1274 = vmatpush3.msra.mxu0 %v496_v42  ;;  %1263 = vmatmul.mubr.f32.gmra.mxu1 %v284_v43  ;;  %v1061_v43 = vld [vmem:[%s1924_s3] ss:$0 sm:$0xff] }
  0x61   : > { %1275 = vmatprep.subr.mxu0 %v1637_v0  ;;  %1297 = vmatprep.mubr.msk.f32.mxu0 %vm1638_vm0, %v1637_v0 }
  0x62   : > { %1276 = vmatpush3.msra.mxu0 %v495_v44  ;;  %1306 = vmatprep.subr.mxu1 %v666_v60  ;;  %v1062_v44 = vadd.s32 4294967295, %v598_v40 }
  0x63   : > { %1277 = vmatprep.subr.mxu0 %v1637_v0  ;;  %1307 = vmatpush3.msra.mxu1 %v666_v60 }
  0x64   : > { %1278 = vmatpush3.msra.mxu0 %v494_v45  ;;  %1308 = vmatprep.subr.mxu1 %v665_v62  ;;  %vm609_vm1 = vcmp.ge.s32.totalorder %v1062_v44, 0 }
  0x65   : > { %1279 = vmatprep.subr.mxu0 %v1637_v0  ;;  %1309 = vmatpush3.msra.mxu1 %v665_v62 }
  0x66   : > { %1280 = vmatpush3.msra.mxu0 %v493_v46  ;;  %1310 = vmatprep.subr.mxu1 %v664_v1 }
  0x67   : > { %1281 = vmatprep.subr.mxu0 %v1637_v0  ;;  %1311 = vmatpush3.msra.mxu1 %v664_v1 }
  0x68   : > { %1282 = vmatpush3.msra.mxu0 %v492_v47  ;;  %1312 = vmatprep.subr.mxu1 %v663_v2 }
  0x69   : > { %1283 = vmatprep.subr.mxu0 %v1637_v0  ;;  %1313 = vmatpush3.msra.mxu1 %v663_v2 }
  0x6a   : > { %1284 = vmatpush3.msra.mxu0 %v491_v48  ;;  %1314 = vmatprep.subr.mxu1 %v662_v4 }
  0x6b   : > { %1285 = vmatprep.subr.mxu0 %v1637_v0  ;;  %1315 = vmatpush3.msra.mxu1 %v662_v4 }
  0x6c   : > { %1286 = vmatpush3.msra.mxu0 %v490_v49  ;;  %1316 = vmatprep.subr.mxu1 %v661_v10 }
  0x6d   : > { %1287 = vmatprep.subr.mxu0 %v1637_v0  ;;  %1317 = vmatpush3.msra.mxu1 %v661_v10  ;;  %v830_v10 = vld [vmem:[#allocation6 + $0x150] sm:$0xff] }
  0x6e   : > { %1288 = vmatpush3.msra.mxu0 %v489_v50  ;;  %1318 = vmatprep.subr.mxu1 %v660_v12  ;;  %v600_v50 = vadd.s32 16, %v598_v40 }
  0x6f   : > { %1289 = vmatprep.subr.mxu0 %v1637_v0  ;;  %1319 = vmatpush3.msra.mxu1 %v660_v12  ;;  %v828_v12 = vld [vmem:[#allocation6 + $0x140] sm:$0xff] }
  0x70   : > { %1290 = vmatpush3.msra.mxu0 %v488_v51  ;;  %1320 = vmatprep.subr.mxu1 %v659_v14  ;;  %v1064_v60 = vadd.s32 4294967295, %v600_v50 }
  0x71   : > { %1291 = vmatprep.subr.mxu0 %v1637_v0  ;;  %1321 = vmatpush3.msra.mxu1 %v659_v14  ;;  %v826_v14 = vld [vmem:[#allocation6 + $0x130] sm:$0xff] }
  0x72   : > { %1292 = vmatpush3.msra.mxu0 %v487_v52  ;;  %1322 = vmatprep.subr.mxu1 %v658_v16  ;;  %vm614_vm2 = vcmp.lt.s32.totalorder %v1064_v60, 16 }
  0x73   : > { %1293 = vmatprep.subr.mxu0 %v1637_v0  ;;  %1323 = vmatpush3.msra.mxu1 %v658_v16  ;;  %v824_v16 = vld [vmem:[#allocation6 + $0x120] sm:$0xff] }
  0x74   : > { %1294 = vmatpush3.msra.mxu0 %v486_v53  ;;  %1324 = vmatprep.subr.mxu1 %v657_v18 }
  0x75   : > { %1295 = vmatprep.subr.mxu0 %v1637_v0  ;;  %1325 = vmatpush3.msra.mxu1 %v657_v18  ;;  %v822_v18 = vld [vmem:[#allocation6 + $0x110] sm:$0xff] }
  0x76   : > { %1296 = vmatpush3.msra.mxu0 %v485_v54  ;;  %1326 = vmatprep.subr.mxu1 %v656_v20 }
  0x77   : > { %1298 = vmatmul.mubr.f32.vlgmr.msra.gmra.mxu0 %v1846_v55  ;;  %1341 = vmatprep.subr.mxu0 %v647_v58 }
  0x78   : > { %1300 = vmatprep.mubr.msk.f32.mxu0 %vm1638_vm0, %v1637_v0  ;;  %1342 = vmatpush3.msra.mxu0 %v647_v58 }
  0x79   : > { %1343 = vmatprep.subr.mxu0 %v646_v59  ;;  %1327 = vmatpush3.msra.mxu1 %v656_v20  ;;  %v820_v20 = vld [vmem:[#allocation6 + $0x100] sm:$0xff] }
  0x7a   : > { %1344 = vmatpush3.msra.mxu0 %v646_v59  ;;  %1328 = vmatprep.subr.mxu1 %v655_v21 }
  0x7b   : > { %1301 = vmatmul.mubr.f32.gmra.mxu0 %v1853_v56  ;;  %1345 = vmatprep.subr.mxu0 %v645_v61 }
  0x7c   : > { %1303 = vmatprep.mubr.msk.f32.mxu0 %vm1638_vm0, %v1637_v0  ;;  %1346 = vmatpush3.msra.mxu0 %v645_v61  ;;  %v643_v0 = vld [vmem:[#allocation6 + $0x58] sm:$0xff] }
  0x7d   : > { %1347 = vmatprep.subr.mxu0 %v644_v63  ;;  %1329 = vmatpush3.msra.mxu1 %v655_v21 }
  0x7e   : > { %1348 = vmatpush3.msra.mxu0 %v644_v63  ;;  %1330 = vmatprep.subr.mxu1 %v654_v22 }
  0x7f   : > { %1304 = vmatmul.mubr.f32.gmra.mxu0 %v483_v57  ;;  %1349 = vmatprep.subr.mxu0 %v643_v0 }
  0x80   : > { %1350 = vmatpush3.msra.mxu0 %v643_v0  ;;  %1331 = vmatpush3.msra.mxu1 %v654_v22 }
  0x81   : > { %1351 = vmatprep.subr.mxu0 %v642_v3  ;;  %1332 = vmatprep.subr.mxu1 %v653_v23 }
  0x82   : > { %1352 = vmatpush3.msra.mxu0 %v642_v3  ;;  %1333 = vmatpush3.msra.mxu1 %v653_v23 }
  0x83   : > { %1353 = vmatprep.subr.mxu0 %v641_v5  ;;  %1334 = vmatprep.subr.mxu1 %v652_v24 }
  0x84   : > { %1354 = vmatpush3.msra.mxu0 %v641_v5  ;;  %1335 = vmatpush3.msra.mxu1 %v652_v24  ;;  %v834_v5 = vld [vmem:[#allocation6 + $0x170] sm:$0xff] }
  0x85   : > { %1355 = vmatprep.subr.mxu0 %v640_v6  ;;  %1336 = vmatprep.subr.mxu1 %v651_v25 }
  0x86   : > { %1356 = vmatpush3.msra.mxu0 %v640_v6  ;;  %1337 = vmatpush3.msra.mxu1 %v651_v25 }
  0x87   : > { %1357 = vmatprep.subr.mxu0 %v639_v7  ;;  %1376 = vmatprep.subr.mxu1 %v835_v26 }
  0x88   : > { %1358 = vmatpush3.msra.mxu0 %v639_v7  ;;  %v833_v7 = vld [vmem:[#allocation6 + $0x168] sm:$0xff] }
  0x89   : > { %1359 = vmatprep.subr.mxu0 %v638_v8 }
  0x8a   : > { %1360 = vmatpush3.msra.mxu0 %v638_v8  ;;  %v832_v8 = vld [vmem:[#allocation6 + $0x160] sm:$0xff] }
  0x8b   : > { %1361 = vmatprep.subr.mxu0 %v637_v9 }
  0x8c   : > { %1362 = vmatpush3.msra.mxu0 %v637_v9  ;;  %v831_v9 = vld [vmem:[#allocation6 + $0x158] sm:$0xff] }
  0x8d   : > { %1363 = vmatprep.subr.mxu0 %v636_v11 }
  0x8e   : > { %1364 = vmatpush3.msra.mxu0 %v636_v11  ;;  %v829_v11 = vld [vmem:[#allocation6 + $0x148] sm:$0xff] }
  0x8f   : > { %1365 = vmatprep.subr.mxu0 %v635_v13 }
  0x90   : > { %1366 = vmatpush3.msra.mxu0 %v635_v13  ;;  %v827_v13 = vld [vmem:[#allocation6 + $0x138] sm:$0xff] }
  0x91   : > { %1367 = vmatprep.subr.mxu0 %v634_v15 }
  0x92   : > { %1368 = vmatpush3.msra.mxu0 %v634_v15  ;;  %v825_v15 = vld [vmem:[#allocation6 + $0x128] sm:$0xff] }
  0x93   : > { %1369 = vmatprep.subr.mxu0 %v633_v17 }
  0x94   : > { %1370 = vmatpush3.msra.mxu0 %v633_v17  ;;  %v823_v17 = vld [vmem:[#allocation6 + $0x118] sm:$0xff] }
  0x95   : > { %1371 = vmatprep.subr.mxu0 %v632_v19 }
  0x96   : > { %1372 = vmatpush3.msra.mxu0 %v632_v19  ;;  %v821_v19 = vld [vmem:[#allocation6 + $0x108] sm:$0xff] }
 0x117   : > { %v387_v27 = vpop.f32.mrf.mxu0 }
 0x118   : > { %v467_v28 = vpop.f32.mrf.mxu1 }
 0x119   : > { %v1217_v29 = vpop.f32.mrf.mxu0  ;;  %v468_v41 = vadd.f32 %v467_v28, %v387_v27  ;;  %v1065_v28 = vld [vmem:[%s1925_s4] ss:$0 sm:$0xff] }
 0x11a   : > { %v1258_v30 = vpop.f32.mrf.mxu1 }
 0x11b   : > { %v392_v31 = vpop.f32.mrf.mxu0 }
 0x11c   : > { %v472_v32 = vpop.f32.mrf.mxu1 }
 0x11d   : > { %v1220_v33 = vpop.f32.mrf.mxu0  ;;  %v473_v47 = vadd.f32 %v472_v32, %v392_v31 }
 0x11e   : > { %v1261_v34 = vpop.f32.mrf.mxu1 }
 0x11f   : > { %v397_v35 = vpop.f32.mrf.mxu0 }
 0x120   : > { %v477_v36 = vpop.f32.mrf.mxu1 }
 0x121   : > { %v1223_v37 = vpop.f32.mrf.mxu0  ;;  %v478_v54 = vadd.f32 %v477_v36, %v397_v35 }
 0x122   : > { %v1264_v38 = vpop.f32.mrf.mxu1 }
 0x137   : > { %v567_v42 = vpop.f32.mrf.mxu0 }
 0x138   : > { %v581_v45 = vadd.f32 %v567_v42, %v468_v41 }
 0x139   : > { %v1299_v46 = vpop.f32.mrf.mxu0 }
 0x13a   : > { %v591_v48 = vadd.f32 %v1061_v43, %v581_v45 }
 0x13b   : > { %v572_v49 = vpop.f32.mrf.mxu0 }
 0x13c   : > { %v594_v51 = vmax.f32 %v591_v48, 0.0  ;;  %v582_v52 = vadd.f32 %v572_v49, %v473_v47 }
 0x13d   : > { %v1302_v53 = vpop.f32.mrf.mxu0 }
 0x13e   : > { %v624_v57 = vsel %vm609_vm1, %v594_v51, 0.0  ;;  %v592_v58 = vadd.f32 %v1061_v43, %v582_v52  ;;  %1494 = vmatprep.mubr.msk.f32.mxu0 %vm609_vm1, %v594_v51 }
 0x13f   : > { %627 = vst [vmem:[#allocation2] sm:$0xff] %v624_v57  ;;  %v577_v59 = vpop.f32.mrf.mxu0 }
 0x140   : > { %v595_v61 = vmax.f32 %v592_v58, 0.0  ;;  %v583_v62 = vadd.f32 %v577_v59, %v478_v54 }
 0x141   : > { %v1305_v63 = vpop.f32.mrf.mxu0 }
 0x142   : > { %628 = vst [vmem:[#allocation2 + $0x8] sm:$0xff] %v595_v61  ;;  %v593_v1 = vadd.f32 %v1061_v43, %v583_v62  ;;  %1374 = vmatmul.mubr.f32.vlgmr.msra.gmra.mxu0 %v595_v61 }
 0x144   : > { %v596_v0 = vmax.f32 %v593_v1, 0.0 }
 0x146   : > { %v626_v2 = vsel %vm614_vm2, %v596_v0, 0.0 }
 0x147   : > { %629 = vst [vmem:[#allocation2 + $0x10] sm:$0x3] %v626_v2 }
 0x149   : > { %v648_v3 = vld [vmem:[#allocation2 + $0x1] sm:$0xff] }
 0x14a   : > { %1338 = vmatprep.mubr.f32.mxu1 %v648_v3  ;;  %v817_v6 = vld [vmem:[#allocation2 + $0x2] sm:$0xff] }
 0x14e   : > { %v649_v4 = vld [vmem:[#allocation2 + $0x9] sm:$0xff] }
 0x14f   : > { %1339 = vmatmul.mubr.f32.vlgmr.msra.gmra.mxu1 %v649_v4  ;;  %v818_v21 = vld [vmem:[#allocation2 + $0xa] sm:$0xff] }
 0x150   : > { %1377 = vmatpush3.msra.mxu1 %v835_v26  ;;  %1408 = vmatprep.mubr.f32.mxu1 %v817_v6 }
 0x151   : > { %1378 = vmatprep.subr.mxu1 %v834_v5 }
 0x152   : > { %1379 = vmatpush3.msra.mxu1 %v834_v5 }
 0x153   : > { %1380 = vmatprep.subr.mxu1 %v833_v7 }
 0x154   : > { %1381 = vmatpush3.msra.mxu1 %v833_v7 }
 0x155   : > { %1382 = vmatprep.subr.mxu1 %v832_v8 }
 0x156   : > { %1383 = vmatpush3.msra.mxu1 %v832_v8 }
 0x157   : > { %1384 = vmatprep.subr.mxu1 %v831_v9 }
 0x158   : > { %1385 = vmatpush3.msra.mxu1 %v831_v9 }
 0x159   : > { %1386 = vmatprep.subr.mxu1 %v830_v10 }
 0x15a   : > { %1387 = vmatpush3.msra.mxu1 %v830_v10 }
 0x15b   : > { %1388 = vmatprep.subr.mxu1 %v829_v11 }
 0x15c   : > { %1389 = vmatpush3.msra.mxu1 %v829_v11 }
 0x15d   : > { %1390 = vmatprep.subr.mxu1 %v828_v12 }
 0x15e   : > { %1391 = vmatpush3.msra.mxu1 %v828_v12 }
 0x15f   : > { %1392 = vmatprep.subr.mxu1 %v827_v13 }
 0x160   : > { %1393 = vmatpush3.msra.mxu1 %v827_v13 }
 0x161   : > { %1394 = vmatprep.subr.mxu1 %v826_v14 }
 0x162   : > { %1395 = vmatpush3.msra.mxu1 %v826_v14 }
 0x163   : > { %1396 = vmatprep.subr.mxu1 %v825_v15 }
 0x164   : > { %1397 = vmatpush3.msra.mxu1 %v825_v15 }
 0x165   : > { %1398 = vmatprep.subr.mxu1 %v824_v16 }
 0x166   : > { %1399 = vmatpush3.msra.mxu1 %v824_v16 }
 0x167   : > { %1400 = vmatprep.subr.mxu1 %v823_v17 }
 0x168   : > { %1401 = vmatpush3.msra.mxu1 %v823_v17 }
 0x169   : > { %1402 = vmatprep.subr.mxu1 %v822_v18 }
 0x16a   : > { %1403 = vmatpush3.msra.mxu1 %v822_v18 }
 0x16b   : > { %1404 = vmatprep.subr.mxu1 %v821_v19 }
 0x16c   : > { %1405 = vmatpush3.msra.mxu1 %v821_v19 }
 0x16d   : > { %1406 = vmatprep.subr.mxu1 %v820_v20 }
 0x16e   : > { %1407 = vmatpush3.msra.mxu1 %v820_v20 }
 0x16f   : > { %1409 = vmatmul.mubr.f32.vlgmr.msra.gmra.mxu1 %v818_v21 }
 0x202   : > { %v1375_v23 = vpop.f32.mrf.mxu0 }
 0x204   : > { %v808_v26 = vpop.f32.mrf.mxu0 }
 0x20f   : > { %v1340_v22 = vpop.f32.mrf.mxu1 }
 0x210   : > { %v814_v25 = vadd.f32 %v1375_v23, %v1340_v22 }
 0x211   : > { %v733_v24 = vpop.f32.mrf.mxu1 }
 0x212   : > { %v809_v29 = vadd.f32 %v808_v26, %v733_v24 }
 0x22f   : > { %v1410_v27 = vpop.f32.mrf.mxu1 }
 0x230   : > { %v912_v30 = vadd.f32 %v1410_v27, %v814_v25 }
 0x231   : > { %v902_v31 = vpop.f32.mrf.mxu1 }
 0x232   : > { %v923_v32 = vadd.f32 %v1065_v28, %v912_v30  ;;  %v911_v33 = vadd.f32 %v902_v31, %v809_v29 }
 0x234   : > { %v925_v34 = vadd.f32 %v923_v32, %v1853_v56  ;;  %v922_v35 = vadd.f32 %v1065_v28, %v911_v33 }
 0x236   : > { %v927_v36 = vmax.f32 %v925_v34, 0.0  ;;  %v924_v37 = vadd.f32 %v922_v35, %v1846_v55 }
 0x238   : > { %929 = vst [vmem:[%s271_s24 + $0x8] sm:$0xff] %v927_v36  ;;  %v926_v38 = vmax.f32 %v924_v37, 0.0 }
 0x23a   : > { %928 = vst [vmem:[%s271_s24] sm:$0xff] %v926_v38 }
 0x23b   : > { %1560 = shalt.err (!%p1557_p9)
}
 0x23c   : > { %s1561_s13 = scalar_lea.hbm %s1874_s8, 256  ;;  %s1565_s16 = scalar_lea.hbm %s1926_s5, 512 }
 0x23d   : > { %p1562_p12 = scmp.ne.s32.totalorder %s1874_s8, %s1561_s13  ;;  %p1566_p5 = scmp.lt.s32.totalorder %s1874_s8, %s1926_s5 }
 0x23e   : > { %p1567_p3 = scmp.lt.s32.totalorder %s1565_s16, %s1561_s13 }
 0x23f   : > { %p1563_p1 = pnand %p1562_p12, %p1933_p10 }
 0x240   : > { %p1568_p4 = por %p1567_p3, %p1566_p5 }
 0x241   : > { %p1564_p2 = pneg %p1563_p1 }
 0x243   : > { %p1569_p8 = pnand %p1568_p4, %p1564_p2 }
 0x245   : > { %1572 = shalt.err (!%p1569_p8)
}
 0x246   : > { %s1640_s27 = smov 128   ;;  %s1641_s29 = smov 8  }
 0x247   : > { %1420 = dma.vmem_to_hbm [thread:$0]  (%p1933_p10), %s1869_s25, 256, %s1874_s8, %s1876_s9, %s1640_s27, %s1640_s27, %s1641_s29  }
 0x248 PF: > { %p1437_p11 = scmp.ge.s32.totalorder %s1631_s23, 2  ;;  %s961_s7 = sand.u32 1, %s1611_s18  }
 0x249   : > { %p1934_p13 = scmp.ne.s32.totalorder %s1929_s30, 0  ;;  %s962_s10 = scalar_lea.sflag [#allocation5], %s961_s7 }
 0x24b   : > { %p1430_p0 = pnand %p1437_p11, %p1934_p13 }
 0x24d   : > { %p1431_p6 = pneg %p1430_p0 }
 0x24f   : > { %1606 = dma.done.wait (%p1431_p6), %s962_s10, 256  }
 0x250   : > { %1608 = vsyncadd (%p1431_p6), %s962_s10, 4294967040  ;;  %s20_s23 = sadd.s32 1, %s1631_s23   ;;  %s1935_s18 = smov %s1615_s19 }
 0x251   : > { %p17_p7 = scmp.ge.s32.totalorder %s20_s23, 4   ;;  %s1936_s19 = smov %s1619_s20 }
 0x252   : > { %s1937_s20 = smov %s1725_s6  ;;  %s1938_s21 = smov %s1627_s22 }
 0x253   : > { %s1939_s22 = smov %s1941_s26  ;;  %19 = sbr.rel (!%p17_p7) target bundleno = 6 (0x6), region = 88 }
 0x258   :  { %967 = vsyncpa [#allocation4], 1 }
 0x259   :  { %969 = vsyncpa [#allocation4 + $0x1], 1 }
 0x25a   :  { %970 = vsyncpa [#allocation7], 1 }
 0x25b   :  { %971 = vsyncpa [#allocation5], 1 }
 0x25c   :  { %973 = vsyncpa [#allocation5 + $0x1], 1 }

// kernel: tpu_custom_call.1
= control target key start
LH: loop header
LB: loop body
LE: loop exit
PB: predicated region body
PF: predicated region fallthrough
CT: control target
= control target key end

     0   :  { %10 = vsyncpa [#allocation4], 0  ;;  %s1921_s0 = inlined_call_operand.vmem [shape: f32[2,1,20,128], index: 0, kind: input, shape index: {}]   ;;  %s1922_s1 = inlined_call_operand.hbm [shape: f32[3,128,128], index: 1, kind: input, shape index: {}]   ;;  %s1923_s2 = inlined_call_operand.hbm [shape: f32[3,128,128], index: 2, kind: input, shape index: {}]   ;;  %s1924_s3 = inlined_call_operand.vmem [shape: f32[1,128], index: 3, kind: input, shape index: {}]   ;;  %s1925_s4 = inlined_call_operand.vmem [shape: f32[1,128], index: 4, kind: input, shape index: {}]   ;;  %s1926_s5 = inlined_call_operand.hbm [shape: f32[2,16,128], index: 5, kind: output, shape index: {}]  }
   0x1   :  { %11 = vsyncpa [#allocation7], 0 }
   0x2   :  { %12 = vsyncpa [#allocation5], 0 }
   0x3   :  { %14 = vsyncpa [#allocation5 + $0x1], 0  ;;  %s1672_s18 = smov 0   ;;  %s1674_s19 = smov 0  }
   0x4   :  { %s1676_s20 = smov 0   ;;  %s1678_s21 = smov 0  }
   0x5   :  { %s1680_s22 = smov 0   ;;  %s1682_s23 = smov 0  }
   0x6 LB: > { %s1050_s24 = sadd.s32 4294967295, %s1631_s23   ;;  %s1051_s25 = sadd.s32 4294967294, %s1631_s23   ;;  %s1631_s23 = sphi %s1682_s23, %s20_s23   ;;  %s1627_s22 = sphi %s1680_s22, %s1939_s22   ;;  %s1623_s21 = sphi %s1678_s21, %s1938_s21   ;;  %s1619_s20 = sphi %s1676_s20, %s1937_s20   ;;  %s1615_s19 = sphi %s1674_s19, %s1936_s19   ;;  %s1611_s18 = sphi %s1672_s18, %s1935_s18  }
   0x7   : > { %s32_s26 = sadd.s32 1, %s1627_s22  ;;  %s153_s27 = sadd.s32 1, %s1619_s20 }
   0x8   : > { %p34_p0 = scmp.ge.s32.totalorder %s32_s26, 2  ;;  %p163_p1 = scmp.ne.s32.totalorder %s1619_s20, %s1615_s19 }
   0x9   : > { %p164_p2 = scmp.eq.s32.totalorder %s1050_s24, 1  ;;  %p169_p3 = scmp.ne.s32.totalorder %s1615_s19, %s1611_s18 }
   0xa   : > { %s1941_s26 = smov (%p34_p0, %s32_s26), 0  ;;  %p170_p5 = scmp.eq.s32.totalorder %s1051_s25, 1 }
   0xb   : > { %p1712_p4 = por %p164_p2, %p163_p1  ;;  %s148_s29 = ssub.s32 %s1627_s22, %s1941_s26 }
   0xc   : > { %p1052_p6 = scmp.ge.s32.totalorder %s1631_s23, 1  ;;  %p151_p7 = scmp.eq.s32.totalorder %s148_s29, 0 }
   0xd   : > { %s1928_s28 = scalar_select %p1712_p4, 1, 0 }
   0xe   : > { %p1719_p8 = por %p170_p5, %p169_p3  ;;  %p177_p9 = scmp.lt.s32.totalorder %s1631_s23, 3 }
   0xf   : > { %s1725_s6 = scalar_select %p151_p7, %s1619_s20, %s153_s27  }
  0x10   : > { %s1929_s30 = scalar_select %p1719_p8, 1, 0 }
  0x11   : > { %p1727_p10 = pnand %p1052_p6, %p177_p9  ;;  %p1731_p11 = scmp.eq.s32.totalorder %s1050_s24, 0 }
  0x12   : > { %s1633_s9 = smov [#allocation3]   ;;  %s1634_s12 = smov [#allocation6]  }
  0x13   : > { %p1422_p12 = pneg %p1727_p10  ;;  %s189_s10 = sshll.u32 %s1633_s9, 4  ;;  %s190_s10 = int_to_ptr.vmem [resolvable:$true] %s189_s10 }
  0x14   : > { %s202_s13 = sshll.u32 %s1634_s12, 4  ;;  %s1506_s14 = scalar_lea.vmem %s190_s10, 6144  ;;  %s203_s13 = int_to_ptr.vmem [resolvable:$true] %s202_s13 }
  0x15   : > { %p1739_p13 = pnand %p1731_p11, %p1422_p12  ;;  %p1507_p1 = scmp.ne.s32.totalorder %s190_s10, %s1506_s14 }
  0x16   : > { %p1514_p5 = scmp.lt.s32.totalorder %s190_s10, %s190_s10  ;;  %p1515_p6 = scmp.lt.s32.totalorder %s1506_s14, %s1506_s14 }
  0x17   : > { %p1497_p0 = pneg %p1739_p13 }
  0x18   : > { %p1516_p7 = por %p1515_p6, %p1514_p5 }
  0x19   : > { %p1509_p2 = pnand %p1507_p1, %p1497_p0 }
  0x1b   : > { %p1510_p3 = pneg %p1509_p2 }
  0x1d   : > { %p1517_p9 = pnand %p1516_p7, %p1510_p3 }
  0x1f   : > { %1520 = shalt.err (!%p1517_p9)
}
  0x20   : > { %s1635_s15 = smov 128   ;;  %s1636_s16 = smov 8  }
  0x21   : > { %1425 = dma.hbm_to_vmem [thread:$0]  (!%p1739_p13), %s1922_s1, 6144, %s190_s10, [#allocation4], %s1635_s15, %s1635_s15, %s1636_s16  }
  0x22   : > { %s1532_s25 = scalar_lea.vmem %s203_s13, 6144  ;;  %p1540_p8 = scmp.lt.s32.totalorder %s203_s13, %s203_s13 }
  0x23   : > { %p1533_p12 = scmp.ne.s32.totalorder %s203_s13, %s1532_s25  ;;  %p1541_p4 = scmp.lt.s32.totalorder %s1532_s25, %s1532_s25 }
  0x25   : > { %p1535_p1 = pnand %p1533_p12, %p1497_p0  ;;  %p1542_p5 = por %p1541_p4, %p1540_p8 }
  0x27   : > { %p1536_p2 = pneg %p1535_p1 }
  0x29   : > { %p1543_p3 = pnand %p1542_p5, %p1536_p2 }
  0x2b   : > { %1546 = shalt.err (!%p1543_p3)
}
  0x2c   : > { %1428 = dma.hbm_to_vmem [thread:$0]  (!%p1739_p13), %s1923_s2, 6144, %s203_s13, [#allocation7], %s1635_s15, %s1635_s15, %s1636_s16  }
  0x2d   : > { %236 = sbr.rel (%p1727_p10) target bundleno = 584 (0x248), region = 40 }
  0x32   : > { %1598 = dma.done.wait (%p1731_p11), [#allocation4], 6144  }
  0x33   : > { %1600 = vsyncadd (%p1731_p11), [#allocation4], 4294961152 }
  0x34   : > { %1602 = dma.done.wait (%p1731_p11), [#allocation7], 6144  }
  0x35   : > { %1604 = vsyncadd (%p1731_p11), [#allocation7], 4294961152  ;;  %v1637_v0 = vmov 0.0   ;;  %vm1638_vm0 = vmmov 0   ;;  %v320_v1 = vld [vmem:[#allocation3 + $0xf8] sm:$0xff]  ;;  %v319_v3 = vld [vmem:[#allocation3 + $0xf0] sm:$0xff] }
  0x36   : > { %1183 = vmatprep.subr.mxu0 %v1637_v0  ;;  %1224 = vmatprep.subr.mxu1 %v1637_v0  ;;  %v300_v2 = vld [vmem:[#allocation3 + $0x78] sm:$0xff]  ;;  %v299_v4 = vld [vmem:[#allocation3 + $0x70] sm:$0xff]  ;;  %v318_v5 = vld [vmem:[#allocation3 + $0xe8] sm:$0xff]  ;;  %p272_p4 = scmp.lt.s32.totalorder %s1623_s21, 1  ;;  %s269_s14 = sand.u32 1, %s1615_s19  }
  0x37   : > { %1215 = vmatprep.mubr.msk.f32.mxu0 %vm1638_vm0, %v1637_v0  ;;  %1256 = vmatprep.mubr.msk.f32.mxu1 %vm1638_vm0, %v1637_v0  ;;  %v298_v6 = vld [vmem:[#allocation3 + $0x68] sm:$0xff]  ;;  %v317_v7 = vld [vmem:[#allocation3 + $0xe0] sm:$0xff]  ;;  %v316_v9 = vld [vmem:[#allocation3 + $0xd8] sm:$0xff]  ;;  %s1059_s15 = sshll.u32 %s269_s14, 4  ;;  %s1071_s27 = sshll.u32 %s1623_s21, 8 }
  0x38   : > { %1184 = vmatpush3.msra.mxu0 %v320_v1  ;;  %1225 = vmatpush3.msra.mxu1 %v300_v2  ;;  %v297_v8 = vld [vmem:[#allocation3 + $0x60] sm:$0xff]  ;;  %v296_v10 = vld [vmem:[#allocation3 + $0x58] sm:$0xff]  ;;  %v315_v11 = vld [vmem:[#allocation3 + $0xd0] sm:$0xff]  ;;  %s273_s7 = scalar_select %p272_p4, %s1623_s21, 1 }
  0x39   : > { %1185 = vmatprep.subr.mxu0 %v1637_v0  ;;  %1226 = vmatprep.subr.mxu1 %v1637_v0  ;;  %v295_v12 = vld [vmem:[#allocation3 + $0x50] sm:$0xff]  ;;  %v314_v13 = vld [vmem:[#allocation3 + $0xc8] sm:$0xff]  ;;  %v313_v15 = vld [vmem:[#allocation3 + $0xc0] sm:$0xff]  ;;  %s271_s24 = scalar_lea.vmem [#allocation8], %s1059_s15  ;;  %s1876_s9 = scalar_lea.sflag [#allocation5], %s269_s14 }
  0x3a   : > { %1186 = vmatpush3.msra.mxu0 %v319_v3  ;;  %1227 = vmatpush3.msra.mxu1 %v299_v4  ;;  %v294_v14 = vld [vmem:[#allocation3 + $0x48] sm:$0xff]  ;;  %v293_v16 = vld [vmem:[#allocation3 + $0x40] sm:$0xff]  ;;  %v312_v17 = vld [vmem:[#allocation3 + $0xb8] sm:$0xff]  ;;  %s1411_s8 = smul.u32 24, %s273_s7  ;;  %s946_s25 = sshll.u32 %s271_s24, 4  ;;  %s1869_s25 = int_to_ptr.vmem [resolvable:$true] %s946_s25 }
  0x3b   : > { %1187 = vmatprep.subr.mxu0 %v1637_v0  ;;  %1228 = vmatprep.subr.mxu1 %v1637_v0  ;;  %v292_v18 = vld [vmem:[#allocation3 + $0x38] sm:$0xff]  ;;  %v311_v19 = vld [vmem:[#allocation3 + $0xb0] sm:$0xff]  ;;  %v310_v21 = vld [vmem:[#allocation3 + $0xa8] sm:$0xff]  ;;  %s1547_s10 = scalar_lea.vmem %s1869_s25, 256  ;;  %p1933_p10 = scmp.ne.s32.totalorder %s1928_s28, 0 }
  0x3c   : > { %1188 = vmatpush3.msra.mxu0 %v318_v5  ;;  %1229 = vmatpush3.msra.mxu1 %v298_v6  ;;  %v291_v20 = vld [vmem:[#allocation3 + $0x30] sm:$0xff]  ;;  %v290_v22 = vld [vmem:[#allocation3 + $0x28] sm:$0xff]  ;;  %v309_v23 = vld [vmem:[#allocation3 + $0xa0] sm:$0xff]  ;;  %s1808_s11 = scalar_lea.vmem %s1921_s0, %s1411_s8  ;;  %s1874_s8 = scalar_lea.hbm %s1926_s5, %s1071_s27 }
  0x3d   : > { %1189 = vmatprep.subr.mxu0 %v1637_v0  ;;  %1230 = vmatprep.subr.mxu1 %v1637_v0  ;;  %v289_v24 = vld [vmem:[#allocation3 + $0x20] sm:$0xff]  ;;  %v308_v25 = vld [vmem:[#allocation3 + $0x98] sm:$0xff]  ;;  %v307_v27 = vld [vmem:[#allocation3 + $0x90] sm:$0xff]  ;;  %p1548_p8 = scmp.ne.s32.totalorder %s1869_s25, %s1547_s10  ;;  %s1639_s21 = smov [#allocation8]  }
  0x3e   : > { %1190 = vmatpush3.msra.mxu0 %v317_v7  ;;  %1231 = vmatpush3.msra.mxu1 %v297_v8  ;;  %v288_v26 = vld [vmem:[#allocation3 + $0x18] sm:$0xff]  ;;  %v287_v28 = vld [vmem:[#allocation3 + $0x10] sm:$0xff]  ;;  %v306_v29 = vld [vmem:[#allocation3 + $0x88] sm:$0xff] }
  0x3f   : > { %1191 = vmatprep.subr.mxu0 %v1637_v0  ;;  %1232 = vmatprep.subr.mxu1 %v1637_v0  ;;  %v286_v30 = vld [vmem:[#allocation3 + $0x8] sm:$0xff]  ;;  %v305_v31 = vld [vmem:[#allocation3 + $0x80] sm:$0xff]  ;;  %v500_v35 = vld [vmem:[#allocation3 + $0x178] sm:$0xff]  ;;  %p1549_p11 = pnand %p1548_p8, %p1933_p10 }
  0x40   : > { %1192 = vmatpush3.msra.mxu0 %v316_v9  ;;  %1233 = vmatpush3.msra.mxu1 %v296_v10  ;;  %v285_v32 = vld [vmem:[#allocation3] sm:$0xff]  ;;  %v301_v33 = vld [vmem:[%s1808_s11 + $0x1] sm:$0xff]  ;;  %v302_v37 = vld [vmem:[%s1808_s11 + $0x9] sm:$0xff] }
  0x41   : > { %1193 = vmatprep.subr.mxu0 %v1637_v0  ;;  %1234 = vmatprep.subr.mxu1 %v1637_v0  ;;  %v282_v34 = vld [vmem:[%s1808_s11] sm:$0xff]  ;;  %v499_v36 = vld [vmem:[#allocation3 + $0x170] sm:$0xff]  ;;  %v497_v40 = vld [vmem:[#allocation3 + $0x160] sm:$0xff]  ;;  %p1550_p13 = pneg %p1549_p11 }
  0x42   : > { %1194 = vmatpush3.msra.mxu0 %v315_v11  ;;  %1235 = vmatpush3.msra.mxu1 %v295_v12  ;;  %v498_v38 = vld [vmem:[#allocation3 + $0x168] sm:$0xff]  ;;  %v283_v39 = vld [vmem:[%s1808_s11 + $0x8] sm:$0xff]  ;;  %v303_v41 = vld [vmem:[%s1808_s11 + $0x11] sm:$0x3] }
  0x43   : > { %1195 = vmatprep.subr.mxu0 %v1637_v0  ;;  %1236 = vmatprep.subr.mxu1 %v1637_v0  ;;  %v496_v42 = vld [vmem:[#allocation3 + $0x158] sm:$0xff]  ;;  %v495_v44 = vld [vmem:[#allocation3 + $0x150] sm:$0xff]  ;;  %v494_v45 = vld [vmem:[#allocation3 + $0x148] sm:$0xff] }
  0x44   : > { %1196 = vmatpush3.msra.mxu0 %v314_v13  ;;  %1237 = vmatpush3.msra.mxu1 %v294_v14  ;;  %v284_v43 = vld [vmem:[%s1808_s11 + $0x10] sm:$0x3]  ;;  %v493_v46 = vld [vmem:[#allocation3 + $0x140] sm:$0xff]  ;;  %v491_v48 = vld [vmem:[#allocation3 + $0x130] sm:$0xff] }
  0x45   : > { %1197 = vmatprep.subr.mxu0 %v1637_v0  ;;  %1238 = vmatprep.subr.mxu1 %v1637_v0  ;;  %v492_v47 = vld [vmem:[#allocation3 + $0x138] sm:$0xff]  ;;  %v490_v49 = vld [vmem:[#allocation3 + $0x128] sm:$0xff]  ;;  %v489_v50 = vld [vmem:[#allocation3 + $0x120] sm:$0xff] }
  0x46   : > { %1198 = vmatpush3.msra.mxu0 %v313_v15  ;;  %1239 = vmatpush3.msra.mxu1 %v293_v16  ;;  %v488_v51 = vld [vmem:[#allocation3 + $0x118] sm:$0xff]  ;;  %v487_v52 = vld [vmem:[#allocation3 + $0x110] sm:$0xff]  ;;  %v486_v53 = vld [vmem:[#allocation3 + $0x108] sm:$0xff] }
  0x47   : > { %1199 = vmatprep.subr.mxu0 %v1637_v0  ;;  %1240 = vmatprep.subr.mxu1 %v1637_v0  ;;  %v485_v54 = vld [vmem:[#allocation3 + $0x100] sm:$0xff]  ;;  %v1846_v55 = vld [vmem:[%s1808_s11 + $0x2] sm:$0xff]  ;;  %v1853_v56 = vld [vmem:[%s1808_s11 + $0xa] sm:$0xff] }
  0x48   : > { %1200 = vmatpush3.msra.mxu0 %v312_v17  ;;  %1241 = vmatpush3.msra.mxu1 %v292_v18  ;;  %v483_v57 = vld [vmem:[%s1808_s11 + $0x12] sm:$0x3]  ;;  %v646_v59 = vld [vmem:[#allocation6 + $0x70] sm:$0xff]  ;;  %v645_v61 = vld [vmem:[#allocation6 + $0x68] sm:$0xff]  ;;  %s1551_s11 = sshll.u32 %s1639_s21, 4  ;;  %s1552_s11 = int_to_ptr.vmem [resolvable:$false] %s1551_s11 }
  0x49   : > { %1201 = vmatprep.subr.mxu0 %v1637_v0  ;;  %1242 = vmatprep.subr.mxu1 %v1637_v0  ;;  %v647_v58 = vld [vmem:[#allocation6 + $0x78] sm:$0xff]  ;;  %v665_v62 = vld [vmem:[#allocation6 + $0xf0] sm:$0xff]  ;;  %v644_v63 = vld [vmem:[#allocation6 + $0x60] sm:$0xff]  ;;  %s1553_s12 = scalar_lea.vmem %s1552_s11, 512  ;;  %p1554_p0 = scmp.lt.s32.totalorder %s1869_s25, %s1552_s11 }
  0x4a   : > { %1202 = vmatpush3.msra.mxu0 %v311_v19  ;;  %1243 = vmatpush3.msra.mxu1 %v291_v20  ;;  %v666_v60 = vld [vmem:[#allocation6 + $0xf8] sm:$0xff]  ;;  %v664_v1 = vld [vmem:[#allocation6 + $0xe8] sm:$0xff]  ;;  %v663_v2 = vld [vmem:[#allocation6 + $0xe0] sm:$0xff]  ;;  %p1555_p6 = scmp.lt.s32.totalorder %s1553_s12, %s1547_s10 }
  0x4b   : > { %1203 = vmatprep.subr.mxu0 %v1637_v0  ;;  %1244 = vmatprep.subr.mxu1 %v1637_v0  ;;  %v642_v3 = vld [vmem:[#allocation6 + $0x50] sm:$0xff]  ;;  %v662_v4 = vld [vmem:[#allocation6 + $0xd8] sm:$0xff]  ;;  %v641_v5 = vld [vmem:[#allocation6 + $0x48] sm:$0xff] }
  0x4c   : > { %1204 = vmatpush3.msra.mxu0 %v310_v21  ;;  %1245 = vmatpush3.msra.mxu1 %v290_v22  ;;  %v640_v6 = vld [vmem:[#allocation6 + $0x40] sm:$0xff]  ;;  %v639_v7 = vld [vmem:[#allocation6 + $0x38] sm:$0xff]  ;;  %v638_v8 = vld [vmem:[#allocation6 + $0x30] sm:$0xff]  ;;  %p1556_p7 = por %p1555_p6, %p1554_p0 }
  0x4d   : > { %1205 = vmatprep.subr.mxu0 %v1637_v0  ;;  %1246 = vmatprep.subr.mxu1 %v1637_v0  ;;  %v637_v9 = vld [vmem:[#allocation6 + $0x28] sm:$0xff]  ;;  %v661_v10 = vld [vmem:[#allocation6 + $0xd0] sm:$0xff]  ;;  %v636_v11 = vld [vmem:[#allocation6 + $0x20] sm:$0xff] }
  0x4e   : > { %1206 = vmatpush3.msra.mxu0 %v309_v23  ;;  %1247 = vmatpush3.msra.mxu1 %v289_v24  ;;  %v660_v12 = vld [vmem:[#allocation6 + $0xc8] sm:$0xff]  ;;  %v635_v13 = vld [vmem:[#allocation6 + $0x18] sm:$0xff]  ;;  %v659_v14 = vld [vmem:[#allocation6 + $0xc0] sm:$0xff]  ;;  %p1557_p9 = pnand %p1556_p7, %p1550_p13 }
  0x4f   : > { %1207 = vmatprep.subr.mxu0 %v1637_v0  ;;  %1248 = vmatprep.subr.mxu1 %v1637_v0  ;;  %v634_v15 = vld [vmem:[#allocation6 + $0x10] sm:$0xff]  ;;  %v658_v16 = vld [vmem:[#allocation6 + $0xb8] sm:$0xff]  ;;  %v633_v17 = vld [vmem:[#allocation6 + $0x8] sm:$0xff] }
  0x50   : > { %1208 = vmatpush3.msra.mxu0 %v308_v25  ;;  %1249 = vmatpush3.msra.mxu1 %v288_v26  ;;  %v657_v18 = vld [vmem:[#allocation6 + $0xb0] sm:$0xff]  ;;  %v632_v19 = vld [vmem:[#allocation6] sm:$0xff]  ;;  %v656_v20 = vld [vmem:[#allocation6 + $0xa8] sm:$0xff] }
  0x51   : > { %1209 = vmatprep.subr.mxu0 %v1637_v0  ;;  %1250 = vmatprep.subr.mxu1 %v1637_v0  ;;  %v655_v21 = vld [vmem:[#allocation6 + $0xa0] sm:$0xff]  ;;  %v654_v22 = vld [vmem:[#allocation6 + $0x98] sm:$0xff]  ;;  %v653_v23 = vld [vmem:[#allocation6 + $0x90] sm:$0xff] }
  0x52   : > { %1210 = vmatpush3.msra.mxu0 %v307_v27  ;;  %1251 = vmatpush3.msra.mxu1 %v287_v28  ;;  %v652_v24 = vld [vmem:[#allocation6 + $0x88] sm:$0xff]  ;;  %v651_v25 = vld [vmem:[#allocation6 + $0x80] sm:$0xff]  ;;  %v835_v26 = vld [vmem:[#allocation6 + $0x178] sm:$0xff] }
  0x53   : > { %1211 = vmatprep.subr.mxu0 %v1637_v0  ;;  %1252 = vmatprep.subr.mxu1 %v1637_v0 }
  0x54   : > { %1212 = vmatpush3.msra.mxu0 %v306_v29  ;;  %1253 = vmatpush3.msra.mxu1 %v286_v30 }
  0x55   : > { %1213 = vmatprep.subr.mxu0 %v1637_v0  ;;  %1254 = vmatprep.subr.mxu1 %v1637_v0 }
  0x56   : > { %1214 = vmatpush3.msra.mxu0 %v305_v31  ;;  %1255 = vmatpush3.msra.mxu1 %v285_v32 }
  0x57   : > { %1216 = vmatmul.mubr.f32.vlgmr.msra.gmra.mxu0 %v301_v33  ;;  %1265 = vmatprep.subr.mxu0 %v1637_v0 }
  0x58   : > { %1257 = vmatmul.mubr.f32.vlgmr.msra.gmra.mxu1 %v282_v34  ;;  %1266 = vmatpush3.msra.mxu0 %v500_v35 }
  0x59   : > { %1267 = vmatprep.subr.mxu0 %v1637_v0  ;;  %1218 = vmatprep.mubr.msk.f32.mxu0 %vm1638_vm0, %v1637_v0 }
  0x5a   : > { %1268 = vmatpush3.msra.mxu0 %v499_v36  ;;  %1259 = vmatprep.mubr.msk.f32.mxu1 %vm1638_vm0, %v1637_v0 }
  0x5b   : > { %1269 = vmatprep.subr.mxu0 %v1637_v0  ;;  %1219 = vmatmul.mubr.f32.gmra.mxu0 %v302_v37 }
  0x5c   : > { %1270 = vmatpush3.msra.mxu0 %v498_v38  ;;  %1260 = vmatmul.mubr.f32.gmra.mxu1 %v283_v39  ;;  %v597_v39 = vlaneseq }
  0x5d   : > { %1271 = vmatprep.subr.mxu0 %v1637_v0  ;;  %1221 = vmatprep.mubr.msk.f32.mxu0 %vm1638_vm0, %v1637_v0 }
  0x5e   : > { %1272 = vmatpush3.msra.mxu0 %v497_v40  ;;  %1262 = vmatprep.mubr.msk.f32.mxu1 %vm1638_vm0, %v1637_v0  ;;  %v598_v40 = vshrl.u32 %v597_v39, 7 }
  0x5f   : > { %1273 = vmatprep.subr.mxu0 %v1637_v0  ;;  %1222 = vmatmul.mubr.f32.gmra.mxu0 %v303_v41 }
  0x60   : > { %1274 = vmatpush3.msra.mxu0 %v496_v42  ;;  %1263 = vmatmul.mubr.f32.gmra.mxu1 %v284_v43  ;;  %v1061_v43 = vld [vmem:[%s1924_s3] ss:$0 sm:$0xff] }
  0x61   : > { %1275 = vmatprep.subr.mxu0 %v1637_v0  ;;  %1297 = vmatprep.mubr.msk.f32.mxu0 %vm1638_vm0, %v1637_v0 }
  0x62   : > { %1276 = vmatpush3.msra.mxu0 %v495_v44  ;;  %1306 = vmatprep.subr.mxu1 %v666_v60  ;;  %v1062_v44 = vadd.s32 4294967295, %v598_v40 }
  0x63   : > { %1277 = vmatprep.subr.mxu0 %v1637_v0  ;;  %1307 = vmatpush3.msra.mxu1 %v666_v60 }
  0x64   : > { %1278 = vmatpush3.msra.mxu0 %v494_v45  ;;  %1308 = vmatprep.subr.mxu1 %v665_v62  ;;  %vm609_vm1 = vcmp.ge.s32.totalorder %v1062_v44, 0 }
  0x65   : > { %1279 = vmatprep.subr.mxu0 %v1637_v0  ;;  %1309 = vmatpush3.msra.mxu1 %v665_v62 }
  0x66   : > { %1280 = vmatpush3.msra.mxu0 %v493_v46  ;;  %1310 = vmatprep.subr.mxu1 %v664_v1 }
  0x67   : > { %1281 = vmatprep.subr.mxu0 %v1637_v0  ;;  %1311 = vmatpush3.msra.mxu1 %v664_v1 }
  0x68   : > { %1282 = vmatpush3.msra.mxu0 %v492_v47  ;;  %1312 = vmatprep.subr.mxu1 %v663_v2 }
  0x69   : > { %1283 = vmatprep.subr.mxu0 %v1637_v0  ;;  %1313 = vmatpush3.msra.mxu1 %v663_v2 }
  0x6a   : > { %1284 = vmatpush3.msra.mxu0 %v491_v48  ;;  %1314 = vmatprep.subr.mxu1 %v662_v4 }
  0x6b   : > { %1285 = vmatprep.subr.mxu0 %v1637_v0  ;;  %1315 = vmatpush3.msra.mxu1 %v662_v4 }
  0x6c   : > { %1286 = vmatpush3.msra.mxu0 %v490_v49  ;;  %1316 = vmatprep.subr.mxu1 %v661_v10 }
  0x6d   : > { %1287 = vmatprep.subr.mxu0 %v1637_v0  ;;  %1317 = vmatpush3.msra.mxu1 %v661_v10  ;;  %v830_v10 = vld [vmem:[#allocation6 + $0x150] sm:$0xff] }
  0x6e   : > { %1288 = vmatpush3.msra.mxu0 %v489_v50  ;;  %1318 = vmatprep.subr.mxu1 %v660_v12  ;;  %v600_v50 = vadd.s32 16, %v598_v40 }
  0x6f   : > { %1289 = vmatprep.subr.mxu0 %v1637_v0  ;;  %1319 = vmatpush3.msra.mxu1 %v660_v12  ;;  %v828_v12 = vld [vmem:[#allocation6 + $0x140] sm:$0xff] }
  0x70   : > { %1290 = vmatpush3.msra.mxu0 %v488_v51  ;;  %1320 = vmatprep.subr.mxu1 %v659_v14  ;;  %v1064_v60 = vadd.s32 4294967295, %v600_v50 }
  0x71   : > { %1291 = vmatprep.subr.mxu0 %v1637_v0  ;;  %1321 = vmatpush3.msra.mxu1 %v659_v14  ;;  %v826_v14 = vld [vmem:[#allocation6 + $0x130] sm:$0xff] }
  0x72   : > { %1292 = vmatpush3.msra.mxu0 %v487_v52  ;;  %1322 = vmatprep.subr.mxu1 %v658_v16  ;;  %vm614_vm2 = vcmp.lt.s32.totalorder %v1064_v60, 16 }
  0x73   : > { %1293 = vmatprep.subr.mxu0 %v1637_v0  ;;  %1323 = vmatpush3.msra.mxu1 %v658_v16  ;;  %v824_v16 = vld [vmem:[#allocation6 + $0x120] sm:$0xff] }
  0x74   : > { %1294 = vmatpush3.msra.mxu0 %v486_v53  ;;  %1324 = vmatprep.subr.mxu1 %v657_v18 }
  0x75   : > { %1295 = vmatprep.subr.mxu0 %v1637_v0  ;;  %1325 = vmatpush3.msra.mxu1 %v657_v18  ;;  %v822_v18 = vld [vmem:[#allocation6 + $0x110] sm:$0xff] }
  0x76   : > { %1296 = vmatpush3.msra.mxu0 %v485_v54  ;;  %1326 = vmatprep.subr.mxu1 %v656_v20 }
  0x77   : > { %1298 = vmatmul.mubr.f32.vlgmr.msra.gmra.mxu0 %v1846_v55  ;;  %1341 = vmatprep.subr.mxu0 %v647_v58 }
  0x78   : > { %1300 = vmatprep.mubr.msk.f32.mxu0 %vm1638_vm0, %v1637_v0  ;;  %1342 = vmatpush3.msra.mxu0 %v647_v58 }
  0x79   : > { %1343 = vmatprep.subr.mxu0 %v646_v59  ;;  %1327 = vmatpush3.msra.mxu1 %v656_v20  ;;  %v820_v20 = vld [vmem:[#allocation6 + $0x100] sm:$0xff] }
  0x7a   : > { %1344 = vmatpush3.msra.mxu0 %v646_v59  ;;  %1328 = vmatprep.subr.mxu1 %v655_v21 }
  0x7b   : > { %1301 = vmatmul.mubr.f32.gmra.mxu0 %v1853_v56  ;;  %1345 = vmatprep.subr.mxu0 %v645_v61 }
  0x7c   : > { %1303 = vmatprep.mubr.msk.f32.mxu0 %vm1638_vm0, %v1637_v0  ;;  %1346 = vmatpush3.msra.mxu0 %v645_v61  ;;  %v643_v0 = vld [vmem:[#allocation6 + $0x58] sm:$0xff] }
  0x7d   : > { %1347 = vmatprep.subr.mxu0 %v644_v63  ;;  %1329 = vmatpush3.msra.mxu1 %v655_v21 }
  0x7e   : > { %1348 = vmatpush3.msra.mxu0 %v644_v63  ;;  %1330 = vmatprep.subr.mxu1 %v654_v22 }
  0x7f   : > { %1304 = vmatmul.mubr.f32.gmra.mxu0 %v483_v57  ;;  %1349 = vmatprep.subr.mxu0 %v643_v0 }
  0x80   : > { %1350 = vmatpush3.msra.mxu0 %v643_v0  ;;  %1331 = vmatpush3.msra.mxu1 %v654_v22 }
  0x81   : > { %1351 = vmatprep.subr.mxu0 %v642_v3  ;;  %1332 = vmatprep.subr.mxu1 %v653_v23 }
  0x82   : > { %1352 = vmatpush3.msra.mxu0 %v642_v3  ;;  %1333 = vmatpush3.msra.mxu1 %v653_v23 }
  0x83   : > { %1353 = vmatprep.subr.mxu0 %v641_v5  ;;  %1334 = vmatprep.subr.mxu1 %v652_v24 }
  0x84   : > { %1354 = vmatpush3.msra.mxu0 %v641_v5  ;;  %1335 = vmatpush3.msra.mxu1 %v652_v24  ;;  %v834_v5 = vld [vmem:[#allocation6 + $0x170] sm:$0xff] }
  0x85   : > { %1355 = vmatprep.subr.mxu0 %v640_v6  ;;  %1336 = vmatprep.subr.mxu1 %v651_v25 }
  0x86   : > { %1356 = vmatpush3.msra.mxu0 %v640_v6  ;;  %1337 = vmatpush3.msra.mxu1 %v651_v25 }
  0x87   : > { %1357 = vmatprep.subr.mxu0 %v639_v7  ;;  %1376 = vmatprep.subr.mxu1 %v835_v26 }
  0x88   : > { %1358 = vmatpush3.msra.mxu0 %v639_v7  ;;  %v833_v7 = vld [vmem:[#allocation6 + $0x168] sm:$0xff] }
  0x89   : > { %1359 = vmatprep.subr.mxu0 %v638_v8 }
  0x8a   : > { %1360 = vmatpush3.msra.mxu0 %v638_v8  ;;  %v832_v8 = vld [vmem:[#allocation6 + $0x160] sm:$0xff] }
  0x8b   : > { %1361 = vmatprep.subr.mxu0 %v637_v9 }
  0x8c   : > { %1362 = vmatpush3.msra.mxu0 %v637_v9  ;;  %v831_v9 = vld [vmem:[#allocation6 + $0x158] sm:$0xff] }
  0x8d   : > { %1363 = vmatprep.subr.mxu0 %v636_v11 }
  0x8e   : > { %1364 = vmatpush3.msra.mxu0 %v636_v11  ;;  %v829_v11 = vld [vmem:[#allocation6 + $0x148] sm:$0xff] }
  0x8f   : > { %1365 = vmatprep.subr.mxu0 %v635_v13 }
  0x90   : > { %1366 = vmatpush3.msra.mxu0 %v635_v13  ;;  %v827_v13 = vld [vmem:[#allocation6 + $0x138] sm:$0xff] }
  0x91   : > { %1367 = vmatprep.subr.mxu0 %v634_v15 }
  0x92   : > { %1368 = vmatpush3.msra.mxu0 %v634_v15  ;;  %v825_v15 = vld [vmem:[#allocation6 + $0x128] sm:$0xff] }
  0x93   : > { %1369 = vmatprep.subr.mxu0 %v633_v17 }
  0x94   : > { %1370 = vmatpush3.msra.mxu0 %v633_v17  ;;  %v823_v17 = vld [vmem:[#allocation6 + $0x118] sm:$0xff] }
  0x95   : > { %1371 = vmatprep.subr.mxu0 %v632_v19 }
  0x96   : > { %1372 = vmatpush3.msra.mxu0 %v632_v19  ;;  %v821_v19 = vld [vmem:[#allocation6 + $0x108] sm:$0xff] }
 0x117   : > { %v387_v27 = vpop.f32.mrf.mxu0 }
 0x118   : > { %v467_v28 = vpop.f32.mrf.mxu1 }
 0x119   : > { %v1217_v29 = vpop.f32.mrf.mxu0  ;;  %v468_v41 = vadd.f32 %v467_v28, %v387_v27  ;;  %v1065_v28 = vld [vmem:[%s1925_s4] ss:$0 sm:$0xff] }
 0x11a   : > { %v1258_v30 = vpop.f32.mrf.mxu1 }
 0x11b   : > { %v392_v31 = vpop.f32.mrf.mxu0 }
 0x11c   : > { %v472_v32 = vpop.f32.mrf.mxu1 }
 0x11d   : > { %v1220_v33 = vpop.f32.mrf.mxu0  ;;  %v473_v47 = vadd.f32 %v472_v32, %v392_v31 }
 0x11e   : > { %v1261_v34 = vpop.f32.mrf.mxu1 }
 0x11f   : > { %v397_v35 = vpop.f32.mrf.mxu0 }
 0x120   : > { %v477_v36 = vpop.f32.mrf.mxu1 }
 0x121   : > { %v1223_v37 = vpop.f32.mrf.mxu0  ;;  %v478_v54 = vadd.f32 %v477_v36, %v397_v35 }
 0x122   : > { %v1264_v38 = vpop.f32.mrf.mxu1 }
 0x137   : > { %v567_v42 = vpop.f32.mrf.mxu0 }
 0x138   : > { %v581_v45 = vadd.f32 %v567_v42, %v468_v41 }
 0x139   : > { %v1299_v46 = vpop.f32.mrf.mxu0 }
 0x13a   : > { %v591_v48 = vadd.f32 %v1061_v43, %v581_v45 }
 0x13b   : > { %v572_v49 = vpop.f32.mrf.mxu0 }
 0x13c   : > { %v594_v51 = vmax.f32 %v591_v48, 0.0  ;;  %v582_v52 = vadd.f32 %v572_v49, %v473_v47 }
 0x13d   : > { %v1302_v53 = vpop.f32.mrf.mxu0 }
 0x13e   : > { %v624_v57 = vsel %vm609_vm1, %v594_v51, 0.0  ;;  %v592_v58 = vadd.f32 %v1061_v43, %v582_v52  ;;  %1494 = vmatprep.mubr.msk.f32.mxu0 %vm609_vm1, %v594_v51 }
 0x13f   : > { %627 = vst [vmem:[#allocation2] sm:$0xff] %v624_v57  ;;  %v577_v59 = vpop.f32.mrf.mxu0 }
 0x140   : > { %v595_v61 = vmax.f32 %v592_v58, 0.0  ;;  %v583_v62 = vadd.f32 %v577_v59, %v478_v54 }
 0x141   : > { %v1305_v63 = vpop.f32.mrf.mxu0 }
 0x142   : > { %628 = vst [vmem:[#allocation2 + $0x8] sm:$0xff] %v595_v61  ;;  %v593_v1 = vadd.f32 %v1061_v43, %v583_v62  ;;  %1374 = vmatmul.mubr.f32.vlgmr.msra.gmra.mxu0 %v595_v61 }
 0x144   : > { %v596_v0 = vmax.f32 %v593_v1, 0.0 }
 0x146   : > { %v626_v2 = vsel %vm614_vm2, %v596_v0, 0.0 }
 0x147   : > { %629 = vst [vmem:[#allocation2 + $0x10] sm:$0x3] %v626_v2 }
 0x149   : > { %v648_v3 = vld [vmem:[#allocation2 + $0x1] sm:$0xff] }
 0x14a   : > { %1338 = vmatprep.mubr.f32.mxu1 %v648_v3  ;;  %v817_v6 = vld [vmem:[#allocation2 + $0x2] sm:$0xff] }
 0x14e   : > { %v649_v4 = vld [vmem:[#allocation2 + $0x9] sm:$0xff] }
 0x14f   : > { %1339 = vmatmul.mubr.f32.vlgmr.msra.gmra.mxu1 %v649_v4  ;;  %v818_v21 = vld [vmem:[#allocation2 + $0xa] sm:$0xff] }
 0x150   : > { %1377 = vmatpush3.msra.mxu1 %v835_v26  ;;  %1408 = vmatprep.mubr.f32.mxu1 %v817_v6 }
 0x151   : > { %1378 = vmatprep.subr.mxu1 %v834_v5 }
 0x152   : > { %1379 = vmatpush3.msra.mxu1 %v834_v5 }
 0x153   : > { %1380 = vmatprep.subr.mxu1 %v833_v7 }
 0x154   : > { %1381 = vmatpush3.msra.mxu1 %v833_v7 }
 0x155   : > { %1382 = vmatprep.subr.mxu1 %v832_v8 }
 0x156   : > { %1383 = vmatpush3.msra.mxu1 %v832_v8 }
 0x157   : > { %1384 = vmatprep.subr.mxu1 %v831_v9 }
 0x158   : > { %1385 = vmatpush3.msra.mxu1 %v831_v9 }
 0x159   : > { %1386 = vmatprep.subr.mxu1 %v830_v10 }
 0x15a   : > { %1387 = vmatpush3.msra.mxu1 %v830_v10 }
 0x15b   : > { %1388 = vmatprep.subr.mxu1 %v829_v11 }
 0x15c   : > { %1389 = vmatpush3.msra.mxu1 %v829_v11 }
 0x15d   : > { %1390 = vmatprep.subr.mxu1 %v828_v12 }
 0x15e   : > { %1391 = vmatpush3.msra.mxu1 %v828_v12 }
 0x15f   : > { %1392 = vmatprep.subr.mxu1 %v827_v13 }
 0x160   : > { %1393 = vmatpush3.msra.mxu1 %v827_v13 }
 0x161   : > { %1394 = vmatprep.subr.mxu1 %v826_v14 }
 0x162   : > { %1395 = vmatpush3.msra.mxu1 %v826_v14 }
 0x163   : > { %1396 = vmatprep.subr.mxu1 %v825_v15 }
 0x164   : > { %1397 = vmatpush3.msra.mxu1 %v825_v15 }
 0x165   : > { %1398 = vmatprep.subr.mxu1 %v824_v16 }
 0x166   : > { %1399 = vmatpush3.msra.mxu1 %v824_v16 }
 0x167   : > { %1400 = vmatprep.subr.mxu1 %v823_v17 }
 0x168   : > { %1401 = vmatpush3.msra.mxu1 %v823_v17 }
 0x169   : > { %1402 = vmatprep.subr.mxu1 %v822_v18 }
 0x16a   : > { %1403 = vmatpush3.msra.mxu1 %v822_v18 }
 0x16b   : > { %1404 = vmatprep.subr.mxu1 %v821_v19 }
 0x16c   : > { %1405 = vmatpush3.msra.mxu1 %v821_v19 }
 0x16d   : > { %1406 = vmatprep.subr.mxu1 %v820_v20 }
 0x16e   : > { %1407 = vmatpush3.msra.mxu1 %v820_v20 }
 0x16f   : > { %1409 = vmatmul.mubr.f32.vlgmr.msra.gmra.mxu1 %v818_v21 }
 0x202   : > { %v1375_v23 = vpop.f32.mrf.mxu0 }
 0x204   : > { %v808_v26 = vpop.f32.mrf.mxu0 }
 0x20f   : > { %v1340_v22 = vpop.f32.mrf.mxu1 }
 0x210   : > { %v814_v25 = vadd.f32 %v1375_v23, %v1340_v22 }
 0x211   : > { %v733_v24 = vpop.f32.mrf.mxu1 }
 0x212   : > { %v809_v29 = vadd.f32 %v808_v26, %v733_v24 }
 0x22f   : > { %v1410_v27 = vpop.f32.mrf.mxu1 }
 0x230   : > { %v912_v30 = vadd.f32 %v1410_v27, %v814_v25 }
 0x231   : > { %v902_v31 = vpop.f32.mrf.mxu1 }
 0x232   : > { %v923_v32 = vadd.f32 %v1065_v28, %v912_v30  ;;  %v911_v33 = vadd.f32 %v902_v31, %v809_v29 }
 0x234   : > { %v925_v34 = vadd.f32 %v923_v32, %v1853_v56  ;;  %v922_v35 = vadd.f32 %v1065_v28, %v911_v33 }
 0x236   : > { %v927_v36 = vmax.f32 %v925_v34, 0.0  ;;  %v924_v37 = vadd.f32 %v922_v35, %v1846_v55 }
 0x238   : > { %929 = vst [vmem:[%s271_s24 + $0x8] sm:$0xff] %v927_v36  ;;  %v926_v38 = vmax.f32 %v924_v37, 0.0 }
 0x23a   : > { %928 = vst [vmem:[%s271_s24] sm:$0xff] %v926_v38 }
 0x23b   : > { %1560 = shalt.err (!%p1557_p9)
}
 0x23c   : > { %s1561_s13 = scalar_lea.hbm %s1874_s8, 256  ;;  %s1565_s16 = scalar_lea.hbm %s1926_s5, 512 }
 0x23d   : > { %p1562_p12 = scmp.ne.s32.totalorder %s1874_s8, %s1561_s13  ;;  %p1566_p5 = scmp.lt.s32.totalorder %s1874_s8, %s1926_s5 }
 0x23e   : > { %p1567_p3 = scmp.lt.s32.totalorder %s1565_s16, %s1561_s13 }
 0x23f   : > { %p1563_p1 = pnand %p1562_p12, %p1933_p10 }
 0x240   : > { %p1568_p4 = por %p1567_p3, %p1566_p5 }
 0x241   : > { %p1564_p2 = pneg %p1563_p1 }
 0x243   : > { %p1569_p8 = pnand %p1568_p4, %p1564_p2 }
 0x245   : > { %1572 = shalt.err (!%p1569_p8)
}
 0x246   : > { %s1640_s27 = smov 128   ;;  %s1641_s29 = smov 8  }
 0x247   : > { %1420 = dma.vmem_to_hbm [thread:$0]  (%p1933_p10), %s1869_s25, 256, %s1874_s8, %s1876_s9, %s1640_s27, %s1640_s27, %s1641_s29  }
 0x248 PF: > { %p1437_p11 = scmp.ge.s32.totalorder %s1631_s23, 2  ;;  %s961_s7 = sand.u32 1, %s1611_s18  }
 0x249   : > { %p1934_p13 = scmp.ne.s32.totalorder %s1929_s30, 0  ;;  %s962_s10 = scalar_lea.sflag [#allocation5], %s961_s7 }
 0x24b   : > { %p1430_p0 = pnand %p1437_p11, %p1934_p13 }
 0x24d   : > { %p1431_p6 = pneg %p1430_p0 }
 0x24f   : > { %1606 = dma.done.wait (%p1431_p6), %s962_s10, 256  }
 0x250   : > { %1608 = vsyncadd (%p1431_p6), %s962_s10, 4294967040  ;;  %s20_s23 = sadd.s32 1, %s1631_s23   ;;  %s1935_s18 = smov %s1615_s19 }
 0x251   : > { %p17_p7 = scmp.ge.s32.totalorder %s20_s23, 4   ;;  %s1936_s19 = smov %s1619_s20 }
 0x252   : > { %s1937_s20 = smov %s1725_s6  ;;  %s1938_s21 = smov %s1627_s22 }
 0x253   : > { %s1939_s22 = smov %s1941_s26  ;;  %19 = sbr.rel (!%p17_p7) target bundleno = 6 (0x6), region = 88 }
 0x258   :  { %967 = vsyncpa [#allocation4], 1 }
 0x259   :  { %969 = vsyncpa [#allocation4 + $0x1], 1 }
 0x25a   :  { %970 = vsyncpa [#allocation7], 1 }
 0x25b   :  { %971 = vsyncpa [#allocation5], 1 }
 0x25c   :  { %973 = vsyncpa [#allocation5 + $0x1], 1 }

</bundles_post_ra>
